<compile_context>
chip_gen: v7x
topology: tpu7x:2x2x1
jax: 0.10.0
libtpu: 0.0.40
codegen_flags: <defaults>
</compile_context>

<pallas_src>
import functools

import jax
import jax.numpy as jnp
from jax import lax
from jax.experimental import pallas as pl
from jax.experimental.pallas import tpu as pltpu


# ----------------------------------------------------------------------------
# VMEM budget / tile selection helpers
# ----------------------------------------------------------------------------

@functools.lru_cache(maxsize=None)
def _vmem_budget_bytes():
    """Generation-aware scoped-VMEM budget (3/4 of physical, capped at 96 MiB)."""
    try:
        cap = int(pltpu.get_tpu_info().vmem_capacity_bytes)
    except Exception:
        cap = 64 * 1024 * 1024  # conservative fallback (safe on v7x)
    return max(32 * 1024 * 1024, min(cap * 3 // 4, 96 * 1024 * 1024))


def _cparams(dimension_semantics):
    return pltpu.CompilerParams(
        dimension_semantics=dimension_semantics,
        vmem_limit_bytes=_vmem_budget_bytes(),
    )


def _pick_tile(dim, base, align=128):
    """Largest tile <= base that divides dim and keeps `align`-alignment.

    Falls back to the full dim (block == array extent) when dim is small or has
    no aligned divisor, which always satisfies the (8, 128) block constraint.
    """
    if dim <= base:
        return dim
    t = base
    while t >= align:
        if dim % t == 0:
            return t
        t //= 2
    return dim


def _shrink_tile(dim, tile, align):
    """Next smaller aligned divisor tile, or `tile` if none exists."""
    t = tile // 2
    while t >= align:
        if dim % t == 0 and t % align == 0:
            return t
        t //= 2
    return tile


# ----------------------------------------------------------------------------
# Kernel bodies  (all matmuls: bf16 operands, f32 accumulation)
# ----------------------------------------------------------------------------

def _matmul_bias_kernel(x_ref, w_ref, b_ref, o_ref):
    # y = x @ w + b, accumulated directly into the resident f32 output block.
    @pl.when(pl.program_id(2) == 0)
    def _():
        o_ref[...] = jnp.broadcast_to(b_ref[...], o_ref.shape)

    o_ref[...] += jnp.dot(
        x_ref[...].astype(jnp.bfloat16),
        w_ref[...].astype(jnp.bfloat16),
        preferred_element_type=jnp.float32,
    )


def _layernorm(y, gamma, beta, eps):
    mean = jnp.mean(y, axis=-1, keepdims=True)
    var = jnp.mean((y - mean) ** 2, axis=-1, keepdims=True)
    return (y - mean) * lax.rsqrt(var + eps) * gamma + beta


def _linear_res_ln_kernel(x_ref, w_ref, b_ref, r_ref, g_ref, be_ref, o_ref, *, eps):
    # LayerNorm(residual + x @ w + b); matmul K-tiled, accumulated in o_ref.
    @pl.when(pl.program_id(1) == 0)
    def _():
        o_ref[...] = jnp.zeros_like(o_ref)

    o_ref[...] += jnp.dot(
        x_ref[...].astype(jnp.bfloat16),
        w_ref[...].astype(jnp.bfloat16),
        preferred_element_type=jnp.float32,
    )

    @pl.when(pl.program_id(1) == pl.num_programs(1) - 1)
    def _():
        y = o_ref[...] + b_ref[...] + r_ref[...]
        o_ref[...] = _layernorm(y, g_ref[...], be_ref[...], eps).astype(o_ref.dtype)


def _ffn_res_ln_kernel(x_ref, w1_ref, b1_ref, w2_ref, b2_ref, r_ref, g_ref,
                       be_ref, o_ref, *, eps):
    # LayerNorm(residual + GELU(x @ w1 + b1) @ w2 + b2); tiled over hidden dim.
    @pl.when(pl.program_id(1) == 0)
    def _():
        o_ref[...] = jnp.zeros_like(o_ref)

    h = jnp.dot(
        x_ref[...].astype(jnp.bfloat16),
        w1_ref[...].astype(jnp.bfloat16),
        preferred_element_type=jnp.float32,
    ) + b1_ref[...]
    # Exact (erf) GELU, matching nn.GELU() default.
    h = 0.5 * h * (1.0 + lax.erf(h * jnp.float32(0.7071067811865476)))
    o_ref[...] += jnp.dot(
        h.astype(jnp.bfloat16),
        w2_ref[...].astype(jnp.bfloat16),
        preferred_element_type=jnp.float32,
    )

    @pl.when(pl.program_id(1) == pl.num_programs(1) - 1)
    def _():
        y = o_ref[...] + b2_ref[...] + r_ref[...]
        o_ref[...] = _layernorm(y, g_ref[...], be_ref[...], eps).astype(o_ref.dtype)


def _attn_kernel(q_ref, kv_ref, o_ref, m_sc, l_sc, acc_sc, *, heads, scale):
    # Flash-style attention.  q_ref: (tq, 3D) resident across the KV axis,
    # kv_ref: (tk, 3D) streamed, o_ref: (tq, D) token-major, written once.
    ki = pl.program_id(2)
    D3 = q_ref.shape[-1]
    D = D3 // 3
    Dh = D // heads

    @pl.when(ki == 0)
    def _():
        m_sc[...] = jnp.full_like(m_sc, -jnp.inf)
        l_sc[...] = jnp.zeros_like(l_sc)
        acc_sc[...] = jnp.zeros_like(acc_sc)

    for h in range(heads):                      # static unroll over heads
        qs = slice(h * Dh, (h + 1) * Dh)
        ks = slice(D + h * Dh, D + (h + 1) * Dh)
        vs = slice(2 * D + h * Dh, 2 * D + (h + 1) * Dh)
        q_h = (q_ref[:, qs] * scale).astype(jnp.bfloat16)   # pre-scale q (O(tq*Dh))
        k_h = kv_ref[:, ks].astype(jnp.bfloat16)
        v_h = kv_ref[:, vs].astype(jnp.bfloat16)
        # Contract the head dims directly: no explicit (S, Dh) transpose.
        s = lax.dot_general(q_h, k_h, (((1,), (1,)), ((), ())),
                            preferred_element_type=jnp.float32)      # (tq, tk)
        hsl = slice(h, h + 1)
        csl = slice(h * Dh, (h + 1) * Dh)
        m_old = m_sc[:, hsl]
        m_new = jnp.maximum(m_old, jnp.max(s, axis=-1, keepdims=True))
        alpha = jnp.exp(m_old - m_new)
        p = jnp.exp(s - m_new)
        l_sc[:, hsl] = alpha * l_sc[:, hsl] + jnp.sum(p, axis=-1, keepdims=True)
        acc_sc[:, csl] = alpha * acc_sc[:, csl] + jnp.dot(
            p.astype(jnp.bfloat16), v_h, preferred_element_type=jnp.float32)
        m_sc[:, hsl] = m_new

    @pl.when(ki == pl.num_programs(2) - 1)
    def _():
        for h in range(heads):                  # per-head direct stores (no concat)
            csl = slice(h * Dh, (h + 1) * Dh)
            inv = pl.reciprocal(l_sc[:, h:h + 1], approx=True)
            o_ref[:, csl] = (acc_sc[:, csl] * inv).astype(o_ref.dtype)


# ----------------------------------------------------------------------------
# pallas_call wrappers
# ----------------------------------------------------------------------------

def linear(x, w, b, *, tm=512, tn=512, tk=512):
    """x: (M, K), w: (K, N), b: (N,) -> x @ w + b, tiled over (M, N, K)."""
    M, K = x.shape
    N = w.shape[1]
    tm = _pick_tile(M, tm, align=8)
    tn = _pick_tile(N, tn)
    tk = _pick_tile(K, tk)
    grid = (M // tm, N // tn, K // tk)
    return pl.pallas_call(
        _matmul_bias_kernel,
        out_shape=jax.ShapeDtypeStruct((M, N), x.dtype),
        grid_spec=pltpu.PrefetchScalarGridSpec(
            num_scalar_prefetch=0,
            grid=grid,
            in_specs=[
                pl.BlockSpec((tm, tk), lambda i, j, k: (i, k)),
                pl.BlockSpec((tk, tn), lambda i, j, k: (k, j)),
                pl.BlockSpec((1, tn), lambda i, j, k: (0, j)),
            ],
            out_specs=pl.BlockSpec((tm, tn), lambda i, j, k: (i, j)),
        ),
        compiler_params=_cparams(("parallel", "parallel", "arbitrary")),
    )(x, w, b.reshape(1, N))


def linear_residual_layernorm(x, w, b, residual, gamma, beta, *,
                              eps=1e-5, tm=512, tk=512):
    """LayerNorm(residual + x @ w + b); x:(M,K), w:(K,D), residual:(M,D)."""
    M, K = x.shape
    D = w.shape[1]
    tm = _pick_tile(M, tm, align=8)
    tk = _pick_tile(K, tk)
    budget = int(_vmem_budget_bytes() * 0.85)

    def est(tm_, tk_):
        return 4 * (2 * (tm_ * tk_ + tk_ * D + 3 * D) + 6 * tm_ * D)

    while est(tm, tk) > budget:
        ntk = _shrink_tile(K, tk, 128)
        if ntk != tk:
            tk = ntk
            continue
        ntm = _shrink_tile(M, tm, 8)
        if ntm != tm:
            tm = ntm
            continue
        break

    grid = (M // tm, K // tk)
    return pl.pallas_call(
        functools.partial(_linear_res_ln_kernel, eps=eps),
        out_shape=jax.ShapeDtypeStruct((M, D), x.dtype),
        grid_spec=pltpu.PrefetchScalarGridSpec(
            num_scalar_prefetch=0,
            grid=grid,
            in_specs=[
                pl.BlockSpec((tm, tk), lambda i, k: (i, k)),   # x
                pl.BlockSpec((tk, D), lambda i, k: (k, 0)),    # w
                pl.BlockSpec((1, D), lambda i, k: (0, 0)),     # b
                pl.BlockSpec((tm, D), lambda i, k: (i, 0)),    # residual
                pl.BlockSpec((1, D), lambda i, k: (0, 0)),     # gamma
                pl.BlockSpec((1, D), lambda i, k: (0, 0)),     # beta
            ],
            out_specs=pl.BlockSpec((tm, D), lambda i, k: (i, 0)),
        ),
        compiler_params=_cparams(("parallel", "arbitrary")),
    )(x, w, b.reshape(1, D), residual, gamma.reshape(1, D), beta.reshape(1, D))


def ffn_residual_layernorm(x, w1, b1, w2, b2, residual, gamma, beta, *,
                           eps=1e-5, tm=512, th=512):
    """LayerNorm(residual + GELU(x@w1+b1)@w2 + b2); tiled over M and hidden."""
    M, D = x.shape
    Hd = w1.shape[1]
    tm = _pick_tile(M, tm, align=8)
    th = _pick_tile(Hd, th)
    budget = int(_vmem_budget_bytes() * 0.85)

    def est(tm_, th_):
        return 4 * (2 * (tm_ * D + D * th_ + th_ + th_ * D + 3 * D)
                    + 4 * tm_ * D + tm_ * th_)

    while est(tm, th) > budget:
        nth = _shrink_tile(Hd, th, 128)
        if nth != th:
            th = nth
            continue
        ntm = _shrink_tile(M, tm, 8)
        if ntm != tm:
            tm = ntm
            continue
        break

    grid = (M // tm, Hd // th)
    return pl.pallas_call(
        functools.partial(_ffn_res_ln_kernel, eps=eps),
        out_shape=jax.ShapeDtypeStruct((M, D), x.dtype),
        grid_spec=pltpu.PrefetchScalarGridSpec(
            num_scalar_prefetch=0,
            grid=grid,
            in_specs=[
                pl.BlockSpec((tm, D), lambda i, h: (i, 0)),    # x
                pl.BlockSpec((D, th), lambda i, h: (0, h)),    # w1
                pl.BlockSpec((1, th), lambda i, h: (0, h)),    # b1
                pl.BlockSpec((th, D), lambda i, h: (h, 0)),    # w2
                pl.BlockSpec((1, D), lambda i, h: (0, 0)),     # b2
                pl.BlockSpec((tm, D), lambda i, h: (i, 0)),    # residual
                pl.BlockSpec((1, D), lambda i, h: (0, 0)),     # gamma
                pl.BlockSpec((1, D), lambda i, h: (0, 0)),     # beta
            ],
            out_specs=pl.BlockSpec((tm, D), lambda i, h: (i, 0)),
        ),
        compiler_params=_cparams(("parallel", "arbitrary")),
    )(x, w1, b1.reshape(1, Hd), w2, b2.reshape(1, D), residual,
      gamma.reshape(1, D), beta.reshape(1, D))


def attention(qkv, heads, *, tq=256, tk=256):
    """qkv: (B, S, 3D) token-major -> context (B, S, D) token-major."""
    B, S, D3 = qkv.shape
    D = D3 // 3
    Dh = D // heads
    scale = 1.0 / float(Dh ** 0.5)
    tq = _pick_tile(S, tq, align=8)
    tk = _pick_tile(S, tk, align=8)
    budget = int(_vmem_budget_bytes() * 0.85)

    def est(tq_, tk_):
        return 4 * (2 * tq_ * D3 + 2 * tk_ * D3 + 3 * tq_ * D
                    + tq_ * tk_ + 4 * tq_ * heads)

    while est(tq, tk) > budget:
        ntk = _shrink_tile(S, tk, 8)
        if ntk != tk:
            tk = ntk
            continue
        ntq = _shrink_tile(S, tq, 8)
        if ntq != tq:
            tq = ntq
            continue
        break

    grid = (B, S // tq, S // tk)
    return pl.pallas_call(
        functools.partial(_attn_kernel, heads=heads, scale=scale),
        out_shape=jax.ShapeDtypeStruct((B, S, D), qkv.dtype),
        grid_spec=pltpu.PrefetchScalarGridSpec(
            num_scalar_prefetch=0,
            grid=grid,
            in_specs=[
                pl.BlockSpec((None, tq, D3), lambda b, qi, ki: (b, qi, 0)),  # q slab (resident)
                pl.BlockSpec((None, tk, D3), lambda b, qi, ki: (b, ki, 0)),  # kv slab (streamed)
            ],
            out_specs=pl.BlockSpec((None, tq, D), lambda b, qi, ki: (b, qi, 0)),
            scratch_shapes=[
                pltpu.VMEM((tq, heads), jnp.float32),   # running max m
                pltpu.VMEM((tq, heads), jnp.float32),   # running denom l
                pltpu.VMEM((tq, D), jnp.float32),       # context accumulator
            ],
        ),
        compiler_params=_cparams(("parallel", "parallel", "arbitrary")),
    )(qkv, qkv)


# ----------------------------------------------------------------------------
# Parameter construction (deterministic, synthetic)
# ----------------------------------------------------------------------------

def init_params(key, vocab_size, dim, depth, heads):
    ks = jax.random.split(key, 3 + depth)
    std = 0.02

    def w(k, shape):
        return (std * jax.random.normal(k, shape)).astype(jnp.float32)

    # Pad the vocab (output) dim of the logits projection to a tile-friendly
    # multiple so the N tile never falls back to the full vocab.
    pad_to = 512 if vocab_size >= 512 else 128
    vpad = -(-vocab_size // pad_to) * pad_to
    logits_w = jnp.zeros((dim, vpad), jnp.float32)
    logits_w = logits_w.at[:, :vocab_size].set(w(ks[2], (dim, vocab_size)))

    params = {
        "token_emb": w(ks[0], (vocab_size, dim)),
        "pos_emb": jnp.zeros((1, 1024, dim), jnp.float32),   # matches nn.Parameter(zeros)
        "to_logits_w": logits_w,
        "to_logits_b": jnp.zeros((vpad,), jnp.float32),
        "layers": [],
    }
    for d in range(depth):
        lks = jax.random.split(ks[3 + d], 4)
        layer = {
            "wqkv": w(lks[0], (dim, 3 * dim)),
            "bqkv": jnp.zeros((3 * dim,), jnp.float32),
            "wo": w(lks[1], (dim, dim)),
            "bo": jnp.zeros((dim,), jnp.float32),
            "ln1_g": jnp.ones((dim,), jnp.float32),
            "ln1_b": jnp.zeros((dim,), jnp.float32),
            "w1": w(lks[2], (dim, 4 * dim)),
            "b1": jnp.zeros((4 * dim,), jnp.float32),
            "w2": w(lks[3], (4 * dim, dim)),
            "b2": jnp.zeros((dim,), jnp.float32),
            "ln2_g": jnp.ones((dim,), jnp.float32),
            "ln2_b": jnp.zeros((dim,), jnp.float32),
        }
        params["layers"].append(layer)
    return params


# ----------------------------------------------------------------------------
# Forward pass (glue in JAX, hot path in Pallas)
# ----------------------------------------------------------------------------

def transformer_forward(tokens, params, heads, vocab_size):
    B, S = tokens.shape
    D = params["token_emb"].shape[1]

    # Embedding gather + positional embedding (plain-JAX glue).
    tok = params["token_emb"][tokens]                       # (B, S, D)
    pos = params["pos_emb"][:, :S, :]                       # (1, S, D) -> broadcast
    x = (tok + pos).reshape(B * S, D)                       # token-major slab

    for lyr in params["layers"]:
        # --- Multi-head attention: QKV proj -> flash attention -> fused
        #     output projection + residual + LayerNorm ---
        qkv = linear(x, lyr["wqkv"], lyr["bqkv"])           # (B*S, 3D)
        ctx = attention(qkv.reshape(B, S, 3 * D), heads)    # (B, S, D) token-major
        ctx = ctx.reshape(B * S, D)                         # free reshape, no transpose
        x = linear_residual_layernorm(
            ctx, lyr["wo"], lyr["bo"], x, lyr["ln1_g"], lyr["ln1_b"])

        # --- Fused FFN + residual + LayerNorm ---
        x = ffn_residual_layernorm(
            x, lyr["w1"], lyr["b1"], lyr["w2"], lyr["b2"], x,
            lyr["ln2_g"], lyr["ln2_b"])

    logits = linear(x, params["to_logits_w"], params["to_logits_b"])  # (B*S, Vpad)
    logits = logits[:, :vocab_size]                                   # drop vocab padding
    return logits.reshape(B, S, vocab_size)


if __name__ == "__main__":
    # Small, module-consistent shapes.
    VOCAB, DIM, DEPTH, HEADS = 64, 32, 2, 4
    B, S = 2, 8

    key = jax.random.PRNGKey(0)
    k_tok, k_par = jax.random.split(key)
    tokens = jax.random.randint(k_tok, (B, S), 0, VOCAB, dtype=jnp.int32)
    params = init_params(k_par, VOCAB, DIM, DEPTH, HEADS)

    fwd = jax.jit(functools.partial(transformer_forward, heads=HEADS,
                                    vocab_size=VOCAB))
    logits = fwd(tokens, params)
    logits = jax.block_until_ready(logits)
    assert logits.shape == (B, S, VOCAB) and logits.dtype == jnp.float32
    print("KERNEL_OK")
</pallas_src>

<mosaic_0001>
module attributes {stable_mosaic.version = 11 : i64} {
  func.func @_matmul_bias_kernel(%arg0: i32, %arg1: i32, %arg2: i32, %arg3: memref<16x32xf32, #tpu.memory_space<vmem>>, %arg4: memref<32x96xf32, #tpu.memory_space<vmem>>, %arg5: memref<1x96xf32, #tpu.memory_space<vmem>>, %arg6: memref<16x96xf32, #tpu.memory_space<vmem>>) attributes {dimension_semantics = [#tpu.dimension_semantics<parallel>, #tpu.dimension_semantics<parallel>, #tpu.dimension_semantics<arbitrary>], iteration_bounds = array<i64: 1, 1, 1>, scalar_prefetch = 0 : i64, scratch_operands = 0 : i64, tpu.core_type = #tpu.core_type<tc>, window_params = [{transform_indices = @transform_0, window_bounds = array<i64: 16, 32>}, {transform_indices = @transform_1, window_bounds = array<i64: 32, 96>}, {transform_indices = @transform_2, window_bounds = array<i64: 1, 96>}, {transform_indices = @transform_3, window_bounds = array<i64: 16, 96>}]} {
    %c0_i32 = arith.constant 0 : i32
    %0 = arith.cmpi eq, %arg2, %c0_i32 : i32
    %1 = arith.extui %0 : i1 to i32
    %c0_i32_0 = arith.constant 0 : i32
    %2 = arith.cmpi ne, %1, %c0_i32_0 : i32
    scf.if %2 {
      %c0_8 = arith.constant 0 : index
      %c0_9 = arith.constant 0 : index
      %11 = vector.load %arg5[%c0_8, %c0_9] : memref<1x96xf32, #tpu.memory_space<vmem>>, vector<1x96xf32>
      %12 = vector.shape_cast %11 : vector<1x96xf32> to vector<1x96xf32>
      %13 = vector.broadcast %12 : vector<1x96xf32> to vector<16x96xf32>
      %c0_10 = arith.constant 0 : index
      %c0_11 = arith.constant 0 : index
      %14 = vector.load %arg6[%c0_10, %c0_11] : memref<16x96xf32, #tpu.memory_space<vmem>>, vector<16x96xf32>
      tpu.vector_store %arg6[%c0_10, %c0_11], %13 {strides = array<i32>} : memref<16x96xf32, #tpu.memory_space<vmem>>, vector<16x96xf32>,
    } else {
    }
    %c0 = arith.constant 0 : index
    %c0_1 = arith.constant 0 : index
    %3 = vector.load %arg6[%c0, %c0_1] : memref<16x96xf32, #tpu.memory_space<vmem>>, vector<16x96xf32>
    %c0_2 = arith.constant 0 : index
    %c0_3 = arith.constant 0 : index
    %4 = vector.load %arg3[%c0_2, %c0_3] : memref<16x32xf32, #tpu.memory_space<vmem>>, vector<16x32xf32>
    %5 = arith.truncf %4 : vector<16x32xf32> to vector<16x32xbf16>
    %c0_4 = arith.constant 0 : index
    %c0_5 = arith.constant 0 : index
    %6 = vector.load %arg4[%c0_4, %c0_5] : memref<32x96xf32, #tpu.memory_space<vmem>>, vector<32x96xf32>
    %7 = arith.truncf %6 : vector<32x96xf32> to vector<32x96xbf16>
    %cst = arith.constant dense<0.000000e+00> : vector<16x96xf32>
    %8 = tpu.matmul %5, %7, %cst {dimension_numbers = #tpu.dot_dimension_numbers<[1], [0], [0], [1], [0, 0, 1, 1], [], []>} : vector<16x32xbf16>, vector<32x96xbf16>, vector<16x96xf32> -> vector<16x96xf32>
    %9 = arith.addf %3, %8 : vector<16x96xf32>
    %c0_6 = arith.constant 0 : index
    %c0_7 = arith.constant 0 : index
    %10 = vector.load %arg6[%c0_6, %c0_7] : memref<16x96xf32, #tpu.memory_space<vmem>>, vector<16x96xf32>
    tpu.vector_store %arg6[%c0_6, %c0_7], %9 {strides = array<i32>} : memref<16x96xf32, #tpu.memory_space<vmem>>, vector<16x96xf32>,
    return
  }
  func.func @transform_0(%arg0: i32, %arg1: i32, %arg2: i32) -> (i32, i32) {
    %c0_i32 = arith.constant 0 : i32
    return %arg0, %arg2 : i32, i32
  }
  func.func @transform_1(%arg0: i32, %arg1: i32, %arg2: i32) -> (i32, i32) {
    %c0_i32 = arith.constant 0 : i32
    return %arg2, %arg1 : i32, i32
  }
  func.func @transform_2(%arg0: i32, %arg1: i32, %arg2: i32) -> (i32, i32) {
    %c0_i32 = arith.constant 0 : i32
    %c0_i32_0 = arith.constant 0 : i32
    return %c0_i32, %arg1 : i32, i32
  }
  func.func @transform_3(%arg0: i32, %arg1: i32, %arg2: i32) -> (i32, i32) {
    %c0_i32 = arith.constant 0 : i32
    return %arg0, %arg1 : i32, i32
  }
}

module attributes {stable_mosaic.version = 11 : i64} {
  func.func @_linear_res_ln_kernel(%arg0: i32, %arg1: i32, %arg2: memref<16x32xf32, #tpu.memory_space<vmem>>, %arg3: memref<32x32xf32, #tpu.memory_space<vmem>>, %arg4: memref<1x32xf32, #tpu.memory_space<vmem>>, %arg5: memref<16x32xf32, #tpu.memory_space<vmem>>, %arg6: memref<1x32xf32, #tpu.memory_space<vmem>>, %arg7: memref<1x32xf32, #tpu.memory_space<vmem>>, %arg8: memref<16x32xf32, #tpu.memory_space<vmem>>) attributes {dimension_semantics = [#tpu.dimension_semantics<parallel>, #tpu.dimension_semantics<arbitrary>], iteration_bounds = array<i64: 1, 1>, scalar_prefetch = 0 : i64, scratch_operands = 0 : i64, tpu.core_type = #tpu.core_type<tc>, window_params = [{transform_indices = @transform_0, window_bounds = array<i64: 16, 32>}, {transform_indices = @transform_1, window_bounds = array<i64: 32, 32>}, {pipeline_mode = #tpu.pipeline_mode<synchronous>, transform_indices = @transform_2, window_bounds = array<i64: 1, 32>}, {transform_indices = @transform_3, window_bounds = array<i64: 16, 32>}, {pipeline_mode = #tpu.pipeline_mode<synchronous>, transform_indices = @transform_4, window_bounds = array<i64: 1, 32>}, {pipeline_mode = #tpu.pipeline_mode<synchronous>, transform_indices = @transform_5, window_bounds = array<i64: 1, 32>}, {transform_indices = @transform_6, window_bounds = array<i64: 16, 32>}]} {
    %c0_i32 = arith.constant 0 : i32
    %0 = arith.cmpi eq, %arg1, %c0_i32 : i32
    %1 = arith.extui %0 : i1 to i32
    %c0_i32_0 = arith.constant 0 : i32
    %2 = arith.cmpi ne, %1, %c0_i32_0 : i32
    scf.if %2 {
      %cst_10 = arith.constant 0.000000e+00 : f32
      %14 = vector.broadcast %cst_10 : f32 to vector<16x32xf32>
      %c0_11 = arith.constant 0 : index
      %c0_12 = arith.constant 0 : index
      %15 = vector.load %arg8[%c0_11, %c0_12] : memref<16x32xf32, #tpu.memory_space<vmem>>, vector<16x32xf32>
      tpu.vector_store %arg8[%c0_11, %c0_12], %14 {strides = array<i32>} : memref<16x32xf32, #tpu.memory_space<vmem>>, vector<16x32xf32>,
    } else {
    }
    %c0 = arith.constant 0 : index
    %c0_1 = arith.constant 0 : index
    %3 = vector.load %arg8[%c0, %c0_1] : memref<16x32xf32, #tpu.memory_space<vmem>>, vector<16x32xf32>
    %c0_2 = arith.constant 0 : index
    %c0_3 = arith.constant 0 : index
    %4 = vector.load %arg2[%c0_2, %c0_3] : memref<16x32xf32, #tpu.memory_space<vmem>>, vector<16x32xf32>
    %5 = arith.truncf %4 : vector<16x32xf32> to vector<16x32xbf16>
    %c0_4 = arith.constant 0 : index
    %c0_5 = arith.constant 0 : index
    %6 = vector.load %arg3[%c0_4, %c0_5] : memref<32x32xf32, #tpu.memory_space<vmem>>, vector<32x32xf32>
    %7 = arith.truncf %6 : vector<32x32xf32> to vector<32x32xbf16>
    %cst = arith.constant dense<0.000000e+00> : vector<16x32xf32>
    %8 = tpu.matmul %5, %7, %cst {dimension_numbers = #tpu.dot_dimension_numbers<[1], [0], [0], [1], [0, 0, 1, 1], [], []>} : vector<16x32xbf16>, vector<32x32xbf16>, vector<16x32xf32> -> vector<16x32xf32>
    %9 = arith.addf %3, %8 : vector<16x32xf32>
    %c0_6 = arith.constant 0 : index
    %c0_7 = arith.constant 0 : index
    %10 = vector.load %arg8[%c0_6, %c0_7] : memref<16x32xf32, #tpu.memory_space<vmem>>, vector<16x32xf32>
    tpu.vector_store %arg8[%c0_6, %c0_7], %9 {strides = array<i32>} : memref<16x32xf32, #tpu.memory_space<vmem>>, vector<16x32xf32>,
    %c0_i32_8 = arith.constant 0 : i32
    %11 = arith.cmpi eq, %arg1, %c0_i32_8 : i32
    %12 = arith.extui %11 : i1 to i32
    %c0_i32_9 = arith.constant 0 : i32
    %13 = arith.cmpi ne, %12, %c0_i32_9 : i32
    scf.if %13 {
      %c0_10 = arith.constant 0 : index
      %c0_11 = arith.constant 0 : index
      %14 = vector.load %arg8[%c0_10, %c0_11] : memref<16x32xf32, #tpu.memory_space<vmem>>, vector<16x32xf32>
      %c0_12 = arith.constant 0 : index
      %c0_13 = arith.constant 0 : index
      %15 = vector.load %arg4[%c0_12, %c0_13] : memref<1x32xf32, #tpu.memory_space<vmem>>, vector<1x32xf32>
      %16 = vector.broadcast %15 : vector<1x32xf32> to vector<16x32xf32>
      %17 = arith.addf %14, %16 : vector<16x32xf32>
      %c0_14 = arith.constant 0 : index
      %c0_15 = arith.constant 0 : index
      %18 = vector.load %arg5[%c0_14, %c0_15] : memref<16x32xf32, #tpu.memory_space<vmem>>, vector<16x32xf32>
      %19 = arith.addf %17, %18 : vector<16x32xf32>
      %c0_16 = arith.constant 0 : index
      %c0_17 = arith.constant 0 : index
      %20 = vector.load %arg6[%c0_16, %c0_17] : memref<1x32xf32, #tpu.memory_space<vmem>>, vector<1x32xf32>
      %c0_18 = arith.constant 0 : index
      %c0_19 = arith.constant 0 : index
      %21 = vector.load %arg7[%c0_18, %c0_19] : memref<1x32xf32, #tpu.memory_space<vmem>>, vector<1x32xf32>
      %cst_20 = arith.constant dense<0.000000e+00> : vector<16xf32>
      %22 = vector.multi_reduction <add>, %19, %cst_20 [1] : vector<16x32xf32> to vector<16xf32>
      %23 = vector.shape_cast %22 : vector<16xf32> to vector<16x1xf32>
      %cst_21 = arith.constant 3.200000e+01 : f32
      %24 = vector.broadcast %cst_21 : f32 to vector<16x1xf32>
      %25 = arith.divf %23, %24 : vector<16x1xf32>
      %26 = vector.broadcast %25 : vector<16x1xf32> to vector<16x32xf32>
      %27 = arith.subf %19, %26 : vector<16x32xf32>
      %28 = arith.mulf %27, %27 : vector<16x32xf32>
      %cst_22 = arith.constant dense<0.000000e+00> : vector<16xf32>
      %29 = vector.multi_reduction <add>, %28, %cst_22 [1] : vector<16x32xf32> to vector<16xf32>
      %30 = vector.shape_cast %29 : vector<16xf32> to vector<16x1xf32>
      %cst_23 = arith.constant 3.200000e+01 : f32
      %31 = vector.broadcast %cst_23 : f32 to vector<16x1xf32>
      %32 = arith.divf %30, %31 : vector<16x1xf32>
      %33 = vector.broadcast %25 : vector<16x1xf32> to vector<16x32xf32>
      %34 = arith.subf %19, %33 : vector<16x32xf32>
      %cst_24 = arith.constant 9.99999974E-6 : f32
      %35 = vector.broadcast %cst_24 : f32 to vector<16x1xf32>
      %36 = arith.addf %32, %35 : vector<16x1xf32>
      %37 = math.rsqrt %36 : vector<16x1xf32>
      %38 = vector.broadcast %37 : vector<16x1xf32> to vector<16x32xf32>
      %39 = arith.mulf %34, %38 : vector<16x32xf32>
      %40 = vector.broadcast %20 : vector<1x32xf32> to vector<16x32xf32>
      %41 = arith.mulf %39, %40 : vector<16x32xf32>
      %42 = vector.broadcast %21 : vector<1x32xf32> to vector<16x32xf32>
      %43 = arith.addf %41, %42 : vector<16x32xf32>
      %c0_25 = arith.constant 0 : index
      %c0_26 = arith.constant 0 : index
      %44 = vector.load %arg8[%c0_25, %c0_26] : memref<16x32xf32, #tpu.memory_space<vmem>>, vector<16x32xf32>
      tpu.vector_store %arg8[%c0_25, %c0_26], %43 {strides = array<i32>} : memref<16x32xf32, #tpu.memory_space<vmem>>, vector<16x32xf32>,
    } else {
    }
    return
  }
  func.func @transform_0(%arg0: i32, %arg1: i32) -> (i32, i32) {
    %c0_i32 = arith.constant 0 : i32
    return %arg0, %arg1 : i32, i32
  }
  func.func @transform_1(%arg0: i32, %arg1: i32) -> (i32, i32) {
    %c0_i32 = arith.constant 0 : i32
    %c0_i32_0 = arith.constant 0 : i32
    return %arg1, %c0_i32 : i32, i32
  }
  func.func @transform_2(%arg0: i32, %arg1: i32) -> (i32, i32) {
    %c0_i32 = arith.constant 0 : i32
    %c0_i32_0 = arith.constant 0 : i32
    %c0_i32_1 = arith.constant 0 : i32
    return %c0_i32, %c0_i32_0 : i32, i32
  }
  func.func @transform_3(%arg0: i32, %arg1: i32) -> (i32, i32) {
    %c0_i32 = arith.constant 0 : i32
    %c0_i32_0 = arith.constant 0 : i32
    return %arg0, %c0_i32 : i32, i32
  }
  func.func @transform_4(%arg0: i32, %arg1: i32) -> (i32, i32) {
    %c0_i32 = arith.constant 0 : i32
    %c0_i32_0 = arith.constant 0 : i32
    %c0_i32_1 = arith.constant 0 : i32
    return %c0_i32, %c0_i32_0 : i32, i32
  }
  func.func @transform_5(%arg0: i32, %arg1: i32) -> (i32, i32) {
    %c0_i32 = arith.constant 0 : i32
    %c0_i32_0 = arith.constant 0 : i32
    %c0_i32_1 = arith.constant 0 : i32
    return %c0_i32, %c0_i32_0 : i32, i32
  }
  func.func @transform_6(%arg0: i32, %arg1: i32) -> (i32, i32) {
    %c0_i32 = arith.constant 0 : i32
    %c0_i32_0 = arith.constant 0 : i32
    return %arg0, %c0_i32 : i32, i32
  }
}

module attributes {stable_mosaic.version = 11 : i64} {
  func.func @_ffn_res_ln_kernel(%arg0: i32, %arg1: i32, %arg2: memref<16x32xf32, #tpu.memory_space<vmem>>, %arg3: memref<32x128xf32, #tpu.memory_space<vmem>>, %arg4: memref<1x128xf32, #tpu.memory_space<vmem>>, %arg5: memref<128x32xf32, #tpu.memory_space<vmem>>, %arg6: memref<1x32xf32, #tpu.memory_space<vmem>>, %arg7: memref<16x32xf32, #tpu.memory_space<vmem>>, %arg8: memref<1x32xf32, #tpu.memory_space<vmem>>, %arg9: memref<1x32xf32, #tpu.memory_space<vmem>>, %arg10: memref<16x32xf32, #tpu.memory_space<vmem>>) attributes {dimension_semantics = [#tpu.dimension_semantics<parallel>, #tpu.dimension_semantics<arbitrary>], iteration_bounds = array<i64: 1, 1>, scalar_prefetch = 0 : i64, scratch_operands = 0 : i64, tpu.core_type = #tpu.core_type<tc>, window_params = [{transform_indices = @transform_0, window_bounds = array<i64: 16, 32>}, {transform_indices = @transform_1, window_bounds = array<i64: 32, 128>}, {transform_indices = @transform_2, window_bounds = array<i64: 1, 128>}, {transform_indices = @transform_3, window_bounds = array<i64: 128, 32>}, {pipeline_mode = #tpu.pipeline_mode<synchronous>, transform_indices = @transform_4, window_bounds = array<i64: 1, 32>}, {transform_indices = @transform_5, window_bounds = array<i64: 16, 32>}, {pipeline_mode = #tpu.pipeline_mode<synchronous>, transform_indices = @transform_6, window_bounds = array<i64: 1, 32>}, {pipeline_mode = #tpu.pipeline_mode<synchronous>, transform_indices = @transform_7, window_bounds = array<i64: 1, 32>}, {transform_indices = @transform_8, window_bounds = array<i64: 16, 32>}]} {
    %c0_i32 = arith.constant 0 : i32
    %0 = arith.cmpi eq, %arg1, %c0_i32 : i32
    %1 = arith.extui %0 : i1 to i32
    %c0_i32_0 = arith.constant 0 : i32
    %2 = arith.cmpi ne, %1, %c0_i32_0 : i32
    scf.if %2 {
      %cst_18 = arith.constant 0.000000e+00 : f32
      %29 = vector.broadcast %cst_18 : f32 to vector<16x32xf32>
      %c0_19 = arith.constant 0 : index
      %c0_20 = arith.constant 0 : index
      %30 = vector.load %arg10[%c0_19, %c0_20] : memref<16x32xf32, #tpu.memory_space<vmem>>, vector<16x32xf32>
      tpu.vector_store %arg10[%c0_19, %c0_20], %29 {strides = array<i32>} : memref<16x32xf32, #tpu.memory_space<vmem>>, vector<16x32xf32>,
    } else {
    }
    %c0 = arith.constant 0 : index
    %c0_1 = arith.constant 0 : index
    %3 = vector.load %arg2[%c0, %c0_1] : memref<16x32xf32, #tpu.memory_space<vmem>>, vector<16x32xf32>
    %4 = arith.truncf %3 : vector<16x32xf32> to vector<16x32xbf16>
    %c0_2 = arith.constant 0 : index
    %c0_3 = arith.constant 0 : index
    %5 = vector.load %arg3[%c0_2, %c0_3] : memref<32x128xf32, #tpu.memory_space<vmem>>, vector<32x128xf32>
    %6 = arith.truncf %5 : vector<32x128xf32> to vector<32x128xbf16>
    %cst = arith.constant dense<0.000000e+00> : vector<16x128xf32>
    %7 = tpu.matmul %4, %6, %cst {dimension_numbers = #tpu.dot_dimension_numbers<[1], [0], [0], [1], [0, 0, 1, 1], [], []>} : vector<16x32xbf16>, vector<32x128xbf16>, vector<16x128xf32> -> vector<16x128xf32>
    %c0_4 = arith.constant 0 : index
    %c0_5 = arith.constant 0 : index
    %8 = vector.load %arg4[%c0_4, %c0_5] : memref<1x128xf32, #tpu.memory_space<vmem>>, vector<1x128xf32>
    %9 = vector.broadcast %8 : vector<1x128xf32> to vector<16x128xf32>
    %10 = arith.addf %7, %9 : vector<16x128xf32>
    %cst_6 = arith.constant 5.000000e-01 : f32
    %11 = vector.broadcast %cst_6 : f32 to vector<16x128xf32>
    %12 = arith.mulf %11, %10 : vector<16x128xf32>
    %cst_7 = arith.constant 0.707106769 : f32
    %13 = vector.broadcast %cst_7 : f32 to vector<16x128xf32>
    %14 = arith.mulf %10, %13 : vector<16x128xf32>
    %15 = math.erf %14 : vector<16x128xf32>
    %cst_8 = arith.constant 1.000000e+00 : f32
    %16 = vector.broadcast %cst_8 : f32 to vector<16x128xf32>
    %17 = arith.addf %16, %15 : vector<16x128xf32>
    %18 = arith.mulf %12, %17 : vector<16x128xf32>
    %c0_9 = arith.constant 0 : index
    %c0_10 = arith.constant 0 : index
    %19 = vector.load %arg10[%c0_9, %c0_10] : memref<16x32xf32, #tpu.memory_space<vmem>>, vector<16x32xf32>
    %20 = arith.truncf %18 : vector<16x128xf32> to vector<16x128xbf16>
    %c0_11 = arith.constant 0 : index
    %c0_12 = arith.constant 0 : index
    %21 = vector.load %arg5[%c0_11, %c0_12] : memref<128x32xf32, #tpu.memory_space<vmem>>, vector<128x32xf32>
    %22 = arith.truncf %21 : vector<128x32xf32> to vector<128x32xbf16>
    %cst_13 = arith.constant dense<0.000000e+00> : vector<16x32xf32>
    %23 = tpu.matmul %20, %22, %cst_13 {dimension_numbers = #tpu.dot_dimension_numbers<[1], [0], [0], [1], [0, 0, 1, 1], [], []>} : vector<16x128xbf16>, vector<128x32xbf16>, vector<16x32xf32> -> vector<16x32xf32>
    %24 = arith.addf %19, %23 : vector<16x32xf32>
    %c0_14 = arith.constant 0 : index
    %c0_15 = arith.constant 0 : index
    %25 = vector.load %arg10[%c0_14, %c0_15] : memref<16x32xf32, #tpu.memory_space<vmem>>, vector<16x32xf32>
    tpu.vector_store %arg10[%c0_14, %c0_15], %24 {strides = array<i32>} : memref<16x32xf32, #tpu.memory_space<vmem>>, vector<16x32xf32>,
    %c0_i32_16 = arith.constant 0 : i32
    %26 = arith.cmpi eq, %arg1, %c0_i32_16 : i32
    %27 = arith.extui %26 : i1 to i32
    %c0_i32_17 = arith.constant 0 : i32
    %28 = arith.cmpi ne, %27, %c0_i32_17 : i32
    scf.if %28 {
      %c0_18 = arith.constant 0 : index
      %c0_19 = arith.constant 0 : index
      %29 = vector.load %arg10[%c0_18, %c0_19] : memref<16x32xf32, #tpu.memory_space<vmem>>, vector<16x32xf32>
      %c0_20 = arith.constant 0 : index
      %c0_21 = arith.constant 0 : index
      %30 = vector.load %arg6[%c0_20, %c0_21] : memref<1x32xf32, #tpu.memory_space<vmem>>, vector<1x32xf32>
      %31 = vector.broadcast %30 : vector<1x32xf32> to vector<16x32xf32>
      %32 = arith.addf %29, %31 : vector<16x32xf32>
      %c0_22 = arith.constant 0 : index
      %c0_23 = arith.constant 0 : index
      %33 = vector.load %arg7[%c0_22, %c0_23] : memref<16x32xf32, #tpu.memory_space<vmem>>, vector<16x32xf32>
      %34 = arith.addf %32, %33 : vector<16x32xf32>
      %c0_24 = arith.constant 0 : index
      %c0_25 = arith.constant 0 : index
      %35 = vector.load %arg8[%c0_24, %c0_25] : memref<1x32xf32, #tpu.memory_space<vmem>>, vector<1x32xf32>
      %c0_26 = arith.constant 0 : index
      %c0_27 = arith.constant 0 : index
      %36 = vector.load %arg9[%c0_26, %c0_27] : memref<1x32xf32, #tpu.memory_space<vmem>>, vector<1x32xf32>
      %cst_28 = arith.constant dense<0.000000e+00> : vector<16xf32>
      %37 = vector.multi_reduction <add>, %34, %cst_28 [1] : vector<16x32xf32> to vector<16xf32>
      %38 = vector.shape_cast %37 : vector<16xf32> to vector<16x1xf32>
      %cst_29 = arith.constant 3.200000e+01 : f32
      %39 = vector.broadcast %cst_29 : f32 to vector<16x1xf32>
      %40 = arith.divf %38, %39 : vector<16x1xf32>
      %41 = vector.broadcast %40 : vector<16x1xf32> to vector<16x32xf32>
      %42 = arith.subf %34, %41 : vector<16x32xf32>
      %43 = arith.mulf %42, %42 : vector<16x32xf32>
      %cst_30 = arith.constant dense<0.000000e+00> : vector<16xf32>
      %44 = vector.multi_reduction <add>, %43, %cst_30 [1] : vector<16x32xf32> to vector<16xf32>
      %45 = vector.shape_cast %44 : vector<16xf32> to vector<16x1xf32>
      %cst_31 = arith.constant 3.200000e+01 : f32
      %46 = vector.broadcast %cst_31 : f32 to vector<16x1xf32>
      %47 = arith.divf %45, %46 : vector<16x1xf32>
      %48 = vector.broadcast %40 : vector<16x1xf32> to vector<16x32xf32>
      %49 = arith.subf %34, %48 : vector<16x32xf32>
      %cst_32 = arith.constant 9.99999974E-6 : f32
      %50 = vector.broadcast %cst_32 : f32 to vector<16x1xf32>
      %51 = arith.addf %47, %50 : vector<16x1xf32>
      %52 = math.rsqrt %51 : vector<16x1xf32>
      %53 = vector.broadcast %52 : vector<16x1xf32> to vector<16x32xf32>
      %54 = arith.mulf %49, %53 : vector<16x32xf32>
      %55 = vector.broadcast %35 : vector<1x32xf32> to vector<16x32xf32>
      %56 = arith.mulf %54, %55 : vector<16x32xf32>
      %57 = vector.broadcast %36 : vector<1x32xf32> to vector<16x32xf32>
      %58 = arith.addf %56, %57 : vector<16x32xf32>
      %c0_33 = arith.constant 0 : index
      %c0_34 = arith.constant 0 : index
      %59 = vector.load %arg10[%c0_33, %c0_34] : memref<16x32xf32, #tpu.memory_space<vmem>>, vector<16x32xf32>
      tpu.vector_store %arg10[%c0_33, %c0_34], %58 {strides = array<i32>} : memref<16x32xf32, #tpu.memory_space<vmem>>, vector<16x32xf32>,
    } else {
    }
    return
  }
  func.func @transform_0(%arg0: i32, %arg1: i32) -> (i32, i32) {
    %c0_i32 = arith.constant 0 : i32
    %c0_i32_0 = arith.constant 0 : i32
    return %arg0, %c0_i32 : i32, i32
  }
  func.func @transform_1(%arg0: i32, %arg1: i32) -> (i32, i32) {
    %c0_i32 = arith.constant 0 : i32
    %c0_i32_0 = arith.constant 0 : i32
    return %c0_i32, %arg1 : i32, i32
  }
  func.func @transform_2(%arg0: i32, %arg1: i32) -> (i32, i32) {
    %c0_i32 = arith.constant 0 : i32
    %c0_i32_0 = arith.constant 0 : i32
    return %c0_i32, %arg1 : i32, i32
  }
  func.func @transform_3(%arg0: i32, %arg1: i32) -> (i32, i32) {
    %c0_i32 = arith.constant 0 : i32
    %c0_i32_0 = arith.constant 0 : i32
    return %arg1, %c0_i32 : i32, i32
  }
  func.func @transform_4(%arg0: i32, %arg1: i32) -> (i32, i32) {
    %c0_i32 = arith.constant 0 : i32
    %c0_i32_0 = arith.constant 0 : i32
    %c0_i32_1 = arith.constant 0 : i32
    return %c0_i32, %c0_i32_0 : i32, i32
  }
  func.func @transform_5(%arg0: i32, %arg1: i32) -> (i32, i32) {
    %c0_i32 = arith.constant 0 : i32
    %c0_i32_0 = arith.constant 0 : i32
    return %arg0, %c0_i32 : i32, i32
  }
  func.func @transform_6(%arg0: i32, %arg1: i32) -> (i32, i32) {
    %c0_i32 = arith.constant 0 : i32
    %c0_i32_0 = arith.constant 0 : i32
    %c0_i32_1 = arith.constant 0 : i32
    return %c0_i32, %c0_i32_0 : i32, i32
  }
  func.func @transform_7(%arg0: i32, %arg1: i32) -> (i32, i32) {
    %c0_i32 = arith.constant 0 : i32
    %c0_i32_0 = arith.constant 0 : i32
    %c0_i32_1 = arith.constant 0 : i32
    return %c0_i32, %c0_i32_0 : i32, i32
  }
  func.func @transform_8(%arg0: i32, %arg1: i32) -> (i32, i32) {
    %c0_i32 = arith.constant 0 : i32
    %c0_i32_0 = arith.constant 0 : i32
    return %arg0, %c0_i32 : i32, i32
  }
}

module attributes {stable_mosaic.version = 11 : i64} {
  func.func @_attn_kernel(%arg0: i32, %arg1: i32, %arg2: i32, %arg3: memref<1x8x96xf32, #tpu.memory_space<vmem>>, %arg4: memref<1x8x96xf32, #tpu.memory_space<vmem>>, %arg5: memref<1x8x32xf32, #tpu.memory_space<vmem>>, %arg6: memref<8x4xf32, #tpu.memory_space<vmem>>, %arg7: memref<8x4xf32, #tpu.memory_space<vmem>>, %arg8: memref<8x32xf32, #tpu.memory_space<vmem>>) attributes {dimension_semantics = [#tpu.dimension_semantics<parallel>, #tpu.dimension_semantics<parallel>, #tpu.dimension_semantics<arbitrary>], iteration_bounds = array<i64: 2, 1, 1>, scalar_prefetch = 0 : i64, scratch_operands = 3 : i64, tpu.core_type = #tpu.core_type<tc>, window_params = [{transform_indices = @transform_0, window_bounds = array<i64: 1, 8, 96>}, {transform_indices = @transform_1, window_bounds = array<i64: 1, 8, 96>}, {transform_indices = @transform_2, window_bounds = array<i64: 1, 8, 32>}]} {
    %c0_i32 = arith.constant 0 : i32
    %0 = arith.cmpi eq, %arg2, %c0_i32 : i32
    %1 = arith.extui %0 : i1 to i32
    %c0_i32_0 = arith.constant 0 : i32
    %2 = arith.cmpi ne, %1, %c0_i32_0 : i32
    scf.if %2 {
      %cst_91 = arith.constant 0xFF800000 : f32
      %146 = vector.broadcast %cst_91 : f32 to vector<8x4xf32>
      %c0_92 = arith.constant 0 : index
      %c0_93 = arith.constant 0 : index
      %147 = vector.load %arg6[%c0_92, %c0_93] : memref<8x4xf32, #tpu.memory_space<vmem>>, vector<8x4xf32>
      tpu.vector_store %arg6[%c0_92, %c0_93], %146 {strides = array<i32>} : memref<8x4xf32, #tpu.memory_space<vmem>>, vector<8x4xf32>,
      %cst_94 = arith.constant 0.000000e+00 : f32
      %148 = vector.broadcast %cst_94 : f32 to vector<8x4xf32>
      %c0_95 = arith.constant 0 : index
      %c0_96 = arith.constant 0 : index
      %149 = vector.load %arg7[%c0_95, %c0_96] : memref<8x4xf32, #tpu.memory_space<vmem>>, vector<8x4xf32>
      tpu.vector_store %arg7[%c0_95, %c0_96], %148 {strides = array<i32>} : memref<8x4xf32, #tpu.memory_space<vmem>>, vector<8x4xf32>,
      %cst_97 = arith.constant 0.000000e+00 : f32
      %150 = vector.broadcast %cst_97 : f32 to vector<8x32xf32>
      %c0_98 = arith.constant 0 : index
      %c0_99 = arith.constant 0 : index
      %151 = vector.load %arg8[%c0_98, %c0_99] : memref<8x32xf32, #tpu.memory_space<vmem>>, vector<8x32xf32>
      tpu.vector_store %arg8[%c0_98, %c0_99], %150 {strides = array<i32>} : memref<8x32xf32, #tpu.memory_space<vmem>>, vector<8x32xf32>,
    } else {
    }
    %c0 = arith.constant 0 : index
    %c0_1 = arith.constant 0 : index
    %c0_2 = arith.constant 0 : index
    %3 = vector.load %arg3[%c0, %c0_1, %c0_2] : memref<1x8x96xf32, #tpu.memory_space<vmem>>, vector<1x8x8xf32>
    %4 = vector.shape_cast %3 : vector<1x8x8xf32> to vector<8x8xf32>
    %cst = arith.constant 0.353553385 : f32
    %5 = vector.broadcast %cst : f32 to vector<8x8xf32>
    %6 = arith.mulf %4, %5 : vector<8x8xf32>
    %7 = arith.truncf %6 : vector<8x8xf32> to vector<8x8xbf16>
    %c0_3 = arith.constant 0 : index
    %c0_4 = arith.constant 0 : index
    %c32 = arith.constant 32 : index
    %8 = vector.load %arg4[%c0_3, %c0_4, %c32] : memref<1x8x96xf32, #tpu.memory_space<vmem>>, vector<1x8x8xf32>
    %9 = vector.shape_cast %8 : vector<1x8x8xf32> to vector<8x8xf32>
    %10 = arith.truncf %9 : vector<8x8xf32> to vector<8x8xbf16>
    %c0_5 = arith.constant 0 : index
    %c0_6 = arith.constant 0 : index
    %c64 = arith.constant 64 : index
    %11 = vector.load %arg4[%c0_5, %c0_6, %c64] : memref<1x8x96xf32, #tpu.memory_space<vmem>>, vector<1x8x8xf32>
    %12 = vector.shape_cast %11 : vector<1x8x8xf32> to vector<8x8xf32>
    %13 = arith.truncf %12 : vector<8x8xf32> to vector<8x8xbf16>
    %cst_7 = arith.constant dense<0.000000e+00> : vector<8x8xf32>
    %14 = tpu.matmul %7, %10, %cst_7 {dimension_numbers = #tpu.dot_dimension_numbers<[1], [1], [0], [0], [0, 0, 1, 0], [], []>} : vector<8x8xbf16>, vector<8x8xbf16>, vector<8x8xf32> -> vector<8x8xf32>
    %c0_8 = arith.constant 0 : index
    %c0_9 = arith.constant 0 : index
    %15 = vector.load %arg6[%c0_8, %c0_9] : memref<8x4xf32, #tpu.memory_space<vmem>>, vector<8x1xf32>
    %cst_10 = arith.constant dense<0xFF800000> : vector<8xf32>
    %16 = vector.multi_reduction <maximumf>, %14, %cst_10 [1] : vector<8x8xf32> to vector<8xf32>
    %17 = vector.shape_cast %16 : vector<8xf32> to vector<8x1xf32>
    %18 = arith.maximumf %15, %17 : vector<8x1xf32>
    %19 = arith.subf %15, %18 : vector<8x1xf32>
    %20 = math.exp %19 : vector<8x1xf32>
    %21 = vector.broadcast %18 : vector<8x1xf32> to vector<8x8xf32>
    %22 = arith.subf %14, %21 : vector<8x8xf32>
    %23 = math.exp %22 : vector<8x8xf32>
    %c0_11 = arith.constant 0 : index
    %c0_12 = arith.constant 0 : index
    %24 = vector.load %arg7[%c0_11, %c0_12] : memref<8x4xf32, #tpu.memory_space<vmem>>, vector<8x1xf32>
    %25 = arith.mulf %20, %24 : vector<8x1xf32>
    %cst_13 = arith.constant dense<0.000000e+00> : vector<8xf32>
    %26 = vector.multi_reduction <add>, %23, %cst_13 [1] : vector<8x8xf32> to vector<8xf32>
    %27 = vector.shape_cast %26 : vector<8xf32> to vector<8x1xf32>
    %28 = arith.addf %25, %27 : vector<8x1xf32>
    %c0_14 = arith.constant 0 : index
    %c0_15 = arith.constant 0 : index
    %29 = vector.load %arg7[%c0_14, %c0_15] : memref<8x4xf32, #tpu.memory_space<vmem>>, vector<8x1xf32>
    tpu.vector_store %arg7[%c0_14, %c0_15], %28 {strides = array<i32>} : memref<8x4xf32, #tpu.memory_space<vmem>>, vector<8x1xf32>,
    %c0_16 = arith.constant 0 : index
    %c0_17 = arith.constant 0 : index
    %30 = vector.load %arg8[%c0_16, %c0_17] : memref<8x32xf32, #tpu.memory_space<vmem>>, vector<8x8xf32>
    %31 = vector.broadcast %20 : vector<8x1xf32> to vector<8x8xf32>
    %32 = arith.mulf %31, %30 : vector<8x8xf32>
    %33 = arith.truncf %23 : vector<8x8xf32> to vector<8x8xbf16>
    %cst_18 = arith.constant dense<0.000000e+00> : vector<8x8xf32>
    %34 = tpu.matmul %33, %13, %cst_18 {dimension_numbers = #tpu.dot_dimension_numbers<[1], [0], [0], [1], [0, 0, 1, 1], [], []>} : vector<8x8xbf16>, vector<8x8xbf16>, vector<8x8xf32> -> vector<8x8xf32>
    %35 = arith.addf %32, %34 : vector<8x8xf32>
    %c0_19 = arith.constant 0 : index
    %c0_20 = arith.constant 0 : index
    %36 = vector.load %arg8[%c0_19, %c0_20] : memref<8x32xf32, #tpu.memory_space<vmem>>, vector<8x8xf32>
    tpu.vector_store %arg8[%c0_19, %c0_20], %35 {strides = array<i32>} : memref<8x32xf32, #tpu.memory_space<vmem>>, vector<8x8xf32>,
    %c0_21 = arith.constant 0 : index
    %c0_22 = arith.constant 0 : index
    %37 = vector.load %arg6[%c0_21, %c0_22] : memref<8x4xf32, #tpu.memory_space<vmem>>, vector<8x1xf32>
    tpu.vector_store %arg6[%c0_21, %c0_22], %18 {strides = array<i32>} : memref<8x4xf32, #tpu.memory_space<vmem>>, vector<8x1xf32>,
    %c0_23 = arith.constant 0 : index
    %c0_24 = arith.constant 0 : index
    %c8 = arith.constant 8 : index
    %38 = vector.load %arg3[%c0_23, %c0_24, %c8] : memref<1x8x96xf32, #tpu.memory_space<vmem>>, vector<1x8x8xf32>
    %39 = vector.shape_cast %38 : vector<1x8x8xf32> to vector<8x8xf32>
    %cst_25 = arith.constant 0.353553385 : f32
    %40 = vector.broadcast %cst_25 : f32 to vector<8x8xf32>
    %41 = arith.mulf %39, %40 : vector<8x8xf32>
    %42 = arith.truncf %41 : vector<8x8xf32> to vector<8x8xbf16>
    %c0_26 = arith.constant 0 : index
    %c0_27 = arith.constant 0 : index
    %c40 = arith.constant 40 : index
    %43 = vector.load %arg4[%c0_26, %c0_27, %c40] : memref<1x8x96xf32, #tpu.memory_space<vmem>>, vector<1x8x8xf32>
    %44 = vector.shape_cast %43 : vector<1x8x8xf32> to vector<8x8xf32>
    %45 = arith.truncf %44 : vector<8x8xf32> to vector<8x8xbf16>
    %c0_28 = arith.constant 0 : index
    %c0_29 = arith.constant 0 : index
    %c72 = arith.constant 72 : index
    %46 = vector.load %arg4[%c0_28, %c0_29, %c72] : memref<1x8x96xf32, #tpu.memory_space<vmem>>, vector<1x8x8xf32>
    %47 = vector.shape_cast %46 : vector<1x8x8xf32> to vector<8x8xf32>
    %48 = arith.truncf %47 : vector<8x8xf32> to vector<8x8xbf16>
    %cst_30 = arith.constant dense<0.000000e+00> : vector<8x8xf32>
    %49 = tpu.matmul %42, %45, %cst_30 {dimension_numbers = #tpu.dot_dimension_numbers<[1], [1], [0], [0], [0, 0, 1, 0], [], []>} : vector<8x8xbf16>, vector<8x8xbf16>, vector<8x8xf32> -> vector<8x8xf32>
    %c0_31 = arith.constant 0 : index
    %c1 = arith.constant 1 : index
    %50 = vector.load %arg6[%c0_31, %c1] : memref<8x4xf32, #tpu.memory_space<vmem>>, vector<8x1xf32>
    %cst_32 = arith.constant dense<0xFF800000> : vector<8xf32>
    %51 = vector.multi_reduction <maximumf>, %49, %cst_32 [1] : vector<8x8xf32> to vector<8xf32>
    %52 = vector.shape_cast %51 : vector<8xf32> to vector<8x1xf32>
    %53 = arith.maximumf %50, %52 : vector<8x1xf32>
    %54 = arith.subf %50, %53 : vector<8x1xf32>
    %55 = math.exp %54 : vector<8x1xf32>
    %56 = vector.broadcast %53 : vector<8x1xf32> to vector<8x8xf32>
    %57 = arith.subf %49, %56 : vector<8x8xf32>
    %58 = math.exp %57 : vector<8x8xf32>
    %c0_33 = arith.constant 0 : index
    %c1_34 = arith.constant 1 : index
    %59 = vector.load %arg7[%c0_33, %c1_34] : memref<8x4xf32, #tpu.memory_space<vmem>>, vector<8x1xf32>
    %60 = arith.mulf %55, %59 : vector<8x1xf32>
    %cst_35 = arith.constant dense<0.000000e+00> : vector<8xf32>
    %61 = vector.multi_reduction <add>, %58, %cst_35 [1] : vector<8x8xf32> to vector<8xf32>
    %62 = vector.shape_cast %61 : vector<8xf32> to vector<8x1xf32>
    %63 = arith.addf %60, %62 : vector<8x1xf32>
    %c0_36 = arith.constant 0 : index
    %c1_37 = arith.constant 1 : index
    %64 = vector.load %arg7[%c0_36, %c1_37] : memref<8x4xf32, #tpu.memory_space<vmem>>, vector<8x1xf32>
    tpu.vector_store %arg7[%c0_36, %c1_37], %63 {strides = array<i32>} : memref<8x4xf32, #tpu.memory_space<vmem>>, vector<8x1xf32>,
    %c0_38 = arith.constant 0 : index
    %c8_39 = arith.constant 8 : index
    %65 = vector.load %arg8[%c0_38, %c8_39] : memref<8x32xf32, #tpu.memory_space<vmem>>, vector<8x8xf32>
    %66 = vector.broadcast %55 : vector<8x1xf32> to vector<8x8xf32>
    %67 = arith.mulf %66, %65 : vector<8x8xf32>
    %68 = arith.truncf %58 : vector<8x8xf32> to vector<8x8xbf16>
    %cst_40 = arith.constant dense<0.000000e+00> : vector<8x8xf32>
    %69 = tpu.matmul %68, %48, %cst_40 {dimension_numbers = #tpu.dot_dimension_numbers<[1], [0], [0], [1], [0, 0, 1, 1], [], []>} : vector<8x8xbf16>, vector<8x8xbf16>, vector<8x8xf32> -> vector<8x8xf32>
    %70 = arith.addf %67, %69 : vector<8x8xf32>
    %c0_41 = arith.constant 0 : index
    %c8_42 = arith.constant 8 : index
    %71 = vector.load %arg8[%c0_41, %c8_42] : memref<8x32xf32, #tpu.memory_space<vmem>>, vector<8x8xf32>
    tpu.vector_store %arg8[%c0_41, %c8_42], %70 {strides = array<i32>} : memref<8x32xf32, #tpu.memory_space<vmem>>, vector<8x8xf32>,
    %c0_43 = arith.constant 0 : index
    %c1_44 = arith.constant 1 : index
    %72 = vector.load %arg6[%c0_43, %c1_44] : memref<8x4xf32, #tpu.memory_space<vmem>>, vector<8x1xf32>
    tpu.vector_store %arg6[%c0_43, %c1_44], %53 {strides = array<i32>} : memref<8x4xf32, #tpu.memory_space<vmem>>, vector<8x1xf32>,
    %c0_45 = arith.constant 0 : index
    %c0_46 = arith.constant 0 : index
    %c16 = arith.constant 16 : index
    %73 = vector.load %arg3[%c0_45, %c0_46, %c16] : memref<1x8x96xf32, #tpu.memory_space<vmem>>, vector<1x8x8xf32>
    %74 = vector.shape_cast %73 : vector<1x8x8xf32> to vector<8x8xf32>
    %cst_47 = arith.constant 0.353553385 : f32
    %75 = vector.broadcast %cst_47 : f32 to vector<8x8xf32>
    %76 = arith.mulf %74, %75 : vector<8x8xf32>
    %77 = arith.truncf %76 : vector<8x8xf32> to vector<8x8xbf16>
    %c0_48 = arith.constant 0 : index
    %c0_49 = arith.constant 0 : index
    %c48 = arith.constant 48 : index
    %78 = vector.load %arg4[%c0_48, %c0_49, %c48] : memref<1x8x96xf32, #tpu.memory_space<vmem>>, vector<1x8x8xf32>
    %79 = vector.shape_cast %78 : vector<1x8x8xf32> to vector<8x8xf32>
    %80 = arith.truncf %79 : vector<8x8xf32> to vector<8x8xbf16>
    %c0_50 = arith.constant 0 : index
    %c0_51 = arith.constant 0 : index
    %c80 = arith.constant 80 : index
    %81 = vector.load %arg4[%c0_50, %c0_51, %c80] : memref<1x8x96xf32, #tpu.memory_space<vmem>>, vector<1x8x8xf32>
    %82 = vector.shape_cast %81 : vector<1x8x8xf32> to vector<8x8xf32>
    %83 = arith.truncf %82 : vector<8x8xf32> to vector<8x8xbf16>
    %cst_52 = arith.constant dense<0.000000e+00> : vector<8x8xf32>
    %84 = tpu.matmul %77, %80, %cst_52 {dimension_numbers = #tpu.dot_dimension_numbers<[1], [1], [0], [0], [0, 0, 1, 0], [], []>} : vector<8x8xbf16>, vector<8x8xbf16>, vector<8x8xf32> -> vector<8x8xf32>
    %c0_53 = arith.constant 0 : index
    %c2 = arith.constant 2 : index
    %85 = vector.load %arg6[%c0_53, %c2] : memref<8x4xf32, #tpu.memory_space<vmem>>, vector<8x1xf32>
    %cst_54 = arith.constant dense<0xFF800000> : vector<8xf32>
    %86 = vector.multi_reduction <maximumf>, %84, %cst_54 [1] : vector<8x8xf32> to vector<8xf32>
    %87 = vector.shape_cast %86 : vector<8xf32> to vector<8x1xf32>
    %88 = arith.maximumf %85, %87 : vector<8x1xf32>
    %89 = arith.subf %85, %88 : vector<8x1xf32>
    %90 = math.exp %89 : vector<8x1xf32>
    %91 = vector.broadcast %88 : vector<8x1xf32> to vector<8x8xf32>
    %92 = arith.subf %84, %91 : vector<8x8xf32>
    %93 = math.exp %92 : vector<8x8xf32>
    %c0_55 = arith.constant 0 : index
    %c2_56 = arith.constant 2 : index
    %94 = vector.load %arg7[%c0_55, %c2_56] : memref<8x4xf32, #tpu.memory_space<vmem>>, vector<8x1xf32>
    %95 = arith.mulf %90, %94 : vector<8x1xf32>
    %cst_57 = arith.constant dense<0.000000e+00> : vector<8xf32>
    %96 = vector.multi_reduction <add>, %93, %cst_57 [1] : vector<8x8xf32> to vector<8xf32>
    %97 = vector.shape_cast %96 : vector<8xf32> to vector<8x1xf32>
    %98 = arith.addf %95, %97 : vector<8x1xf32>
    %c0_58 = arith.constant 0 : index
    %c2_59 = arith.constant 2 : index
    %99 = vector.load %arg7[%c0_58, %c2_59] : memref<8x4xf32, #tpu.memory_space<vmem>>, vector<8x1xf32>
    tpu.vector_store %arg7[%c0_58, %c2_59], %98 {strides = array<i32>} : memref<8x4xf32, #tpu.memory_space<vmem>>, vector<8x1xf32>,
    %c0_60 = arith.constant 0 : index
    %c16_61 = arith.constant 16 : index
    %100 = vector.load %arg8[%c0_60, %c16_61] : memref<8x32xf32, #tpu.memory_space<vmem>>, vector<8x8xf32>
    %101 = vector.broadcast %90 : vector<8x1xf32> to vector<8x8xf32>
    %102 = arith.mulf %101, %100 : vector<8x8xf32>
    %103 = arith.truncf %93 : vector<8x8xf32> to vector<8x8xbf16>
    %cst_62 = arith.constant dense<0.000000e+00> : vector<8x8xf32>
    %104 = tpu.matmul %103, %83, %cst_62 {dimension_numbers = #tpu.dot_dimension_numbers<[1], [0], [0], [1], [0, 0, 1, 1], [], []>} : vector<8x8xbf16>, vector<8x8xbf16>, vector<8x8xf32> -> vector<8x8xf32>
    %105 = arith.addf %102, %104 : vector<8x8xf32>
    %c0_63 = arith.constant 0 : index
    %c16_64 = arith.constant 16 : index
    %106 = vector.load %arg8[%c0_63, %c16_64] : memref<8x32xf32, #tpu.memory_space<vmem>>, vector<8x8xf32>
    tpu.vector_store %arg8[%c0_63, %c16_64], %105 {strides = array<i32>} : memref<8x32xf32, #tpu.memory_space<vmem>>, vector<8x8xf32>,
    %c0_65 = arith.constant 0 : index
    %c2_66 = arith.constant 2 : index
    %107 = vector.load %arg6[%c0_65, %c2_66] : memref<8x4xf32, #tpu.memory_space<vmem>>, vector<8x1xf32>
    tpu.vector_store %arg6[%c0_65, %c2_66], %88 {strides = array<i32>} : memref<8x4xf32, #tpu.memory_space<vmem>>, vector<8x1xf32>,
    %c0_67 = arith.constant 0 : index
    %c0_68 = arith.constant 0 : index
    %c24 = arith.constant 24 : index
    %108 = vector.load %arg3[%c0_67, %c0_68, %c24] : memref<1x8x96xf32, #tpu.memory_space<vmem>>, vector<1x8x8xf32>
    %109 = vector.shape_cast %108 : vector<1x8x8xf32> to vector<8x8xf32>
    %cst_69 = arith.constant 0.353553385 : f32
    %110 = vector.broadcast %cst_69 : f32 to vector<8x8xf32>
    %111 = arith.mulf %109, %110 : vector<8x8xf32>
    %112 = arith.truncf %111 : vector<8x8xf32> to vector<8x8xbf16>
    %c0_70 = arith.constant 0 : index
    %c0_71 = arith.constant 0 : index
    %c56 = arith.constant 56 : index
    %113 = vector.load %arg4[%c0_70, %c0_71, %c56] : memref<1x8x96xf32, #tpu.memory_space<vmem>>, vector<1x8x8xf32>
    %114 = vector.shape_cast %113 : vector<1x8x8xf32> to vector<8x8xf32>
    %115 = arith.truncf %114 : vector<8x8xf32> to vector<8x8xbf16>
    %c0_72 = arith.constant 0 : index
    %c0_73 = arith.constant 0 : index
    %c88 = arith.constant 88 : index
    %116 = vector.load %arg4[%c0_72, %c0_73, %c88] : memref<1x8x96xf32, #tpu.memory_space<vmem>>, vector<1x8x8xf32>
    %117 = vector.shape_cast %116 : vector<1x8x8xf32> to vector<8x8xf32>
    %118 = arith.truncf %117 : vector<8x8xf32> to vector<8x8xbf16>
    %cst_74 = arith.constant dense<0.000000e+00> : vector<8x8xf32>
    %119 = tpu.matmul %112, %115, %cst_74 {dimension_numbers = #tpu.dot_dimension_numbers<[1], [1], [0], [0], [0, 0, 1, 0], [], []>} : vector<8x8xbf16>, vector<8x8xbf16>, vector<8x8xf32> -> vector<8x8xf32>
    %c0_75 = arith.constant 0 : index
    %c3 = arith.constant 3 : index
    %120 = vector.load %arg6[%c0_75, %c3] : memref<8x4xf32, #tpu.memory_space<vmem>>, vector<8x1xf32>
    %cst_76 = arith.constant dense<0xFF800000> : vector<8xf32>
    %121 = vector.multi_reduction <maximumf>, %119, %cst_76 [1] : vector<8x8xf32> to vector<8xf32>
    %122 = vector.shape_cast %121 : vector<8xf32> to vector<8x1xf32>
    %123 = arith.maximumf %120, %122 : vector<8x1xf32>
    %124 = arith.subf %120, %123 : vector<8x1xf32>
    %125 = math.exp %124 : vector<8x1xf32>
    %126 = vector.broadcast %123 : vector<8x1xf32> to vector<8x8xf32>
    %127 = arith.subf %119, %126 : vector<8x8xf32>
    %128 = math.exp %127 : vector<8x8xf32>
    %c0_77 = arith.constant 0 : index
    %c3_78 = arith.constant 3 : index
    %129 = vector.load %arg7[%c0_77, %c3_78] : memref<8x4xf32, #tpu.memory_space<vmem>>, vector<8x1xf32>
    %130 = arith.mulf %125, %129 : vector<8x1xf32>
    %cst_79 = arith.constant dense<0.000000e+00> : vector<8xf32>
    %131 = vector.multi_reduction <add>, %128, %cst_79 [1] : vector<8x8xf32> to vector<8xf32>
    %132 = vector.shape_cast %131 : vector<8xf32> to vector<8x1xf32>
    %133 = arith.addf %130, %132 : vector<8x1xf32>
    %c0_80 = arith.constant 0 : index
    %c3_81 = arith.constant 3 : index
    %134 = vector.load %arg7[%c0_80, %c3_81] : memref<8x4xf32, #tpu.memory_space<vmem>>, vector<8x1xf32>
    tpu.vector_store %arg7[%c0_80, %c3_81], %133 {strides = array<i32>} : memref<8x4xf32, #tpu.memory_space<vmem>>, vector<8x1xf32>,
    %c0_82 = arith.constant 0 : index
    %c24_83 = arith.constant 24 : index
    %135 = vector.load %arg8[%c0_82, %c24_83] : memref<8x32xf32, #tpu.memory_space<vmem>>, vector<8x8xf32>
    %136 = vector.broadcast %125 : vector<8x1xf32> to vector<8x8xf32>
    %137 = arith.mulf %136, %135 : vector<8x8xf32>
    %138 = arith.truncf %128 : vector<8x8xf32> to vector<8x8xbf16>
    %cst_84 = arith.constant dense<0.000000e+00> : vector<8x8xf32>
    %139 = tpu.matmul %138, %118, %cst_84 {dimension_numbers = #tpu.dot_dimension_numbers<[1], [0], [0], [1], [0, 0, 1, 1], [], []>} : vector<8x8xbf16>, vector<8x8xbf16>, vector<8x8xf32> -> vector<8x8xf32>
    %140 = arith.addf %137, %139 : vector<8x8xf32>
    %c0_85 = arith.constant 0 : index
    %c24_86 = arith.constant 24 : index
    %141 = vector.load %arg8[%c0_85, %c24_86] : memref<8x32xf32, #tpu.memory_space<vmem>>, vector<8x8xf32>
    tpu.vector_store %arg8[%c0_85, %c24_86], %140 {strides = array<i32>} : memref<8x32xf32, #tpu.memory_space<vmem>>, vector<8x8xf32>,
    %c0_87 = arith.constant 0 : index
    %c3_88 = arith.constant 3 : index
    %142 = vector.load %arg6[%c0_87, %c3_88] : memref<8x4xf32, #tpu.memory_space<vmem>>, vector<8x1xf32>
    tpu.vector_store %arg6[%c0_87, %c3_88], %123 {strides = array<i32>} : memref<8x4xf32, #tpu.memory_space<vmem>>, vector<8x1xf32>,
    %c0_i32_89 = arith.constant 0 : i32
    %143 = arith.cmpi eq, %arg2, %c0_i32_89 : i32
    %144 = arith.extui %143 : i1 to i32
    %c0_i32_90 = arith.constant 0 : i32
    %145 = arith.cmpi ne, %144, %c0_i32_90 : i32
    scf.if %145 {
      %c0_91 = arith.constant 0 : index
      %c0_92 = arith.constant 0 : index
      %146 = vector.load %arg7[%c0_91, %c0_92] : memref<8x4xf32, #tpu.memory_space<vmem>>, vector<8x1xf32>
      %147 = tpu.reciprocal %146 {approx = true} : vector<8x1xf32> -> vector<8x1xf32>
      %c0_93 = arith.constant 0 : index
      %c0_94 = arith.constant 0 : index
      %148 = vector.load %arg8[%c0_93, %c0_94] : memref<8x32xf32, #tpu.memory_space<vmem>>, vector<8x8xf32>
      %149 = vector.broadcast %147 : vector<8x1xf32> to vector<8x8xf32>
      %150 = arith.mulf %148, %149 : vector<8x8xf32>
      %c0_95 = arith.constant 0 : index
      %c0_96 = arith.constant 0 : index
      %c0_97 = arith.constant 0 : index
      %151 = vector.load %arg5[%c0_95, %c0_96, %c0_97] : memref<1x8x32xf32, #tpu.memory_space<vmem>>, vector<1x8x8xf32>
      %152 = vector.shape_cast %151 : vector<1x8x8xf32> to vector<8x8xf32>
      %153 = vector.shape_cast %150 : vector<8x8xf32> to vector<1x8x8xf32>
      tpu.vector_store %arg5[%c0_95, %c0_96, %c0_97], %153 {strides = array<i32>} : memref<1x8x32xf32, #tpu.memory_space<vmem>>, vector<1x8x8xf32>,
      %c0_98 = arith.constant 0 : index
      %c1_99 = arith.constant 1 : index
      %154 = vector.load %arg7[%c0_98, %c1_99] : memref<8x4xf32, #tpu.memory_space<vmem>>, vector<8x1xf32>
      %155 = tpu.reciprocal %154 {approx = true} : vector<8x1xf32> -> vector<8x1xf32>
      %c0_100 = arith.constant 0 : index
      %c8_101 = arith.constant 8 : index
      %156 = vector.load %arg8[%c0_100, %c8_101] : memref<8x32xf32, #tpu.memory_space<vmem>>, vector<8x8xf32>
      %157 = vector.broadcast %155 : vector<8x1xf32> to vector<8x8xf32>
      %158 = arith.mulf %156, %157 : vector<8x8xf32>
      %c0_102 = arith.constant 0 : index
      %c0_103 = arith.constant 0 : index
      %c8_104 = arith.constant 8 : index
      %159 = vector.load %arg5[%c0_102, %c0_103, %c8_104] : memref<1x8x32xf32, #tpu.memory_space<vmem>>, vector<1x8x8xf32>
      %160 = vector.shape_cast %159 : vector<1x8x8xf32> to vector<8x8xf32>
      %161 = vector.shape_cast %158 : vector<8x8xf32> to vector<1x8x8xf32>
      tpu.vector_store %arg5[%c0_102, %c0_103, %c8_104], %161 {strides = array<i32>} : memref<1x8x32xf32, #tpu.memory_space<vmem>>, vector<1x8x8xf32>,
      %c0_105 = arith.constant 0 : index
      %c2_106 = arith.constant 2 : index
      %162 = vector.load %arg7[%c0_105, %c2_106] : memref<8x4xf32, #tpu.memory_space<vmem>>, vector<8x1xf32>
      %163 = tpu.reciprocal %162 {approx = true} : vector<8x1xf32> -> vector<8x1xf32>
      %c0_107 = arith.constant 0 : index
      %c16_108 = arith.constant 16 : index
      %164 = vector.load %arg8[%c0_107, %c16_108] : memref<8x32xf32, #tpu.memory_space<vmem>>, vector<8x8xf32>
      %165 = vector.broadcast %163 : vector<8x1xf32> to vector<8x8xf32>
      %166 = arith.mulf %164, %165 : vector<8x8xf32>
      %c0_109 = arith.constant 0 : index
      %c0_110 = arith.constant 0 : index
      %c16_111 = arith.constant 16 : index
      %167 = vector.load %arg5[%c0_109, %c0_110, %c16_111] : memref<1x8x32xf32, #tpu.memory_space<vmem>>, vector<1x8x8xf32>
      %168 = vector.shape_cast %167 : vector<1x8x8xf32> to vector<8x8xf32>
      %169 = vector.shape_cast %166 : vector<8x8xf32> to vector<1x8x8xf32>
      tpu.vector_store %arg5[%c0_109, %c0_110, %c16_111], %169 {strides = array<i32>} : memref<1x8x32xf32, #tpu.memory_space<vmem>>, vector<1x8x8xf32>,
      %c0_112 = arith.constant 0 : index
      %c3_113 = arith.constant 3 : index
      %170 = vector.load %arg7[%c0_112, %c3_113] : memref<8x4xf32, #tpu.memory_space<vmem>>, vector<8x1xf32>
      %171 = tpu.reciprocal %170 {approx = true} : vector<8x1xf32> -> vector<8x1xf32>
      %c0_114 = arith.constant 0 : index
      %c24_115 = arith.constant 24 : index
      %172 = vector.load %arg8[%c0_114, %c24_115] : memref<8x32xf32, #tpu.memory_space<vmem>>, vector<8x8xf32>
      %173 = vector.broadcast %171 : vector<8x1xf32> to vector<8x8xf32>
      %174 = arith.mulf %172, %173 : vector<8x8xf32>
      %c0_116 = arith.constant 0 : index
      %c0_117 = arith.constant 0 : index
      %c24_118 = arith.constant 24 : index
      %175 = vector.load %arg5[%c0_116, %c0_117, %c24_118] : memref<1x8x32xf32, #tpu.memory_space<vmem>>, vector<1x8x8xf32>
      %176 = vector.shape_cast %175 : vector<1x8x8xf32> to vector<8x8xf32>
      %177 = vector.shape_cast %174 : vector<8x8xf32> to vector<1x8x8xf32>
      tpu.vector_store %arg5[%c0_116, %c0_117, %c24_118], %177 {strides = array<i32>} : memref<1x8x32xf32, #tpu.memory_space<vmem>>, vector<1x8x8xf32>,
    } else {
    }
    return
  }
  func.func @transform_0(%arg0: i32, %arg1: i32, %arg2: i32) -> (i32, i32, i32) {
    %c0_i32 = arith.constant 0 : i32
    %c0_i32_0 = arith.constant 0 : i32
    return %arg0, %arg1, %c0_i32 : i32, i32, i32
  }
  func.func @transform_1(%arg0: i32, %arg1: i32, %arg2: i32) -> (i32, i32, i32) {
    %c0_i32 = arith.constant 0 : i32
    %c0_i32_0 = arith.constant 0 : i32
    return %arg0, %arg2, %c0_i32 : i32, i32, i32
  }
  func.func @transform_2(%arg0: i32, %arg1: i32, %arg2: i32) -> (i32, i32, i32) {
    %c0_i32 = arith.constant 0 : i32
    %c0_i32_0 = arith.constant 0 : i32
    return %arg0, %arg1, %c0_i32 : i32, i32, i32
  }
}

module attributes {stable_mosaic.version = 11 : i64} {
  func.func @_matmul_bias_kernel(%arg0: i32, %arg1: i32, %arg2: i32, %arg3: memref<16x32xf32, #tpu.memory_space<vmem>>, %arg4: memref<32x128xf32, #tpu.memory_space<vmem>>, %arg5: memref<1x128xf32, #tpu.memory_space<vmem>>, %arg6: memref<16x128xf32, #tpu.memory_space<vmem>>) attributes {dimension_semantics = [#tpu.dimension_semantics<parallel>, #tpu.dimension_semantics<parallel>, #tpu.dimension_semantics<arbitrary>], iteration_bounds = array<i64: 1, 1, 1>, scalar_prefetch = 0 : i64, scratch_operands = 0 : i64, tpu.core_type = #tpu.core_type<tc>, window_params = [{transform_indices = @transform_0, window_bounds = array<i64: 16, 32>}, {transform_indices = @transform_1, window_bounds = array<i64: 32, 128>}, {transform_indices = @transform_2, window_bounds = array<i64: 1, 128>}, {transform_indices = @transform_3, window_bounds = array<i64: 16, 128>}]} {
    %c0_i32 = arith.constant 0 : i32
    %0 = arith.cmpi eq, %arg2, %c0_i32 : i32
    %1 = arith.extui %0 : i1 to i32
    %c0_i32_0 = arith.constant 0 : i32
    %2 = arith.cmpi ne, %1, %c0_i32_0 : i32
    scf.if %2 {
      %c0_8 = arith.constant 0 : index
      %c0_9 = arith.constant 0 : index
      %11 = vector.load %arg5[%c0_8, %c0_9] : memref<1x128xf32, #tpu.memory_space<vmem>>, vector<1x128xf32>
      %12 = vector.shape_cast %11 : vector<1x128xf32> to vector<1x128xf32>
      %13 = vector.broadcast %12 : vector<1x128xf32> to vector<16x128xf32>
      %c0_10 = arith.constant 0 : index
      %c0_11 = arith.constant 0 : index
      %14 = vector.load %arg6[%c0_10, %c0_11] : memref<16x128xf32, #tpu.memory_space<vmem>>, vector<16x128xf32>
      tpu.vector_store %arg6[%c0_10, %c0_11], %13 {strides = array<i32>} : memref<16x128xf32, #tpu.memory_space<vmem>>, vector<16x128xf32>,
    } else {
    }
    %c0 = arith.constant 0 : index
    %c0_1 = arith.constant 0 : index
    %3 = vector.load %arg6[%c0, %c0_1] : memref<16x128xf32, #tpu.memory_space<vmem>>, vector<16x128xf32>
    %c0_2 = arith.constant 0 : index
    %c0_3 = arith.constant 0 : index
    %4 = vector.load %arg3[%c0_2, %c0_3] : memref<16x32xf32, #tpu.memory_space<vmem>>, vector<16x32xf32>
    %5 = arith.truncf %4 : vector<16x32xf32> to vector<16x32xbf16>
    %c0_4 = arith.constant 0 : index
    %c0_5 = arith.constant 0 : index
    %6 = vector.load %arg4[%c0_4, %c0_5] : memref<32x128xf32, #tpu.memory_space<vmem>>, vector<32x128xf32>
    %7 = arith.truncf %6 : vector<32x128xf32> to vector<32x128xbf16>
    %cst = arith.constant dense<0.000000e+00> : vector<16x128xf32>
    %8 = tpu.matmul %5, %7, %cst {dimension_numbers = #tpu.dot_dimension_numbers<[1], [0], [0], [1], [0, 0, 1, 1], [], []>} : vector<16x32xbf16>, vector<32x128xbf16>, vector<16x128xf32> -> vector<16x128xf32>
    %9 = arith.addf %3, %8 : vector<16x128xf32>
    %c0_6 = arith.constant 0 : index
    %c0_7 = arith.constant 0 : index
    %10 = vector.load %arg6[%c0_6, %c0_7] : memref<16x128xf32, #tpu.memory_space<vmem>>, vector<16x128xf32>
    tpu.vector_store %arg6[%c0_6, %c0_7], %9 {strides = array<i32>} : memref<16x128xf32, #tpu.memory_space<vmem>>, vector<16x128xf32>,
    return
  }
  func.func @transform_0(%arg0: i32, %arg1: i32, %arg2: i32) -> (i32, i32) {
    %c0_i32 = arith.constant 0 : i32
    return %arg0, %arg2 : i32, i32
  }
  func.func @transform_1(%arg0: i32, %arg1: i32, %arg2: i32) -> (i32, i32) {
    %c0_i32 = arith.constant 0 : i32
    return %arg2, %arg1 : i32, i32
  }
  func.func @transform_2(%arg0: i32, %arg1: i32, %arg2: i32) -> (i32, i32) {
    %c0_i32 = arith.constant 0 : i32
    %c0_i32_0 = arith.constant 0 : i32
    return %c0_i32, %arg1 : i32, i32
  }
  func.func @transform_3(%arg0: i32, %arg1: i32, %arg2: i32) -> (i32, i32) {
    %c0_i32 = arith.constant 0 : i32
    return %arg0, %arg1 : i32, i32
  }
}

</mosaic_0001>

<bundles_post_ra>
// kernel: transformer_forward.9
= control target key start
LH: loop header
LB: loop body
LE: loop exit
PB: predicated region body
PF: predicated region fallthrough
CT: control target
= control target key end

     0   :  { %v109_v0 = vmov 0.0   ;;  %vm110_vm0 = vmmov 0   ;;  %vm26_vm1 = vcmask 785408   ;;  %vm40_vm2 = vcmask 261120   ;;  %s174_s1 = inlined_call_operand.vmem [shape: f32[32,96], index: 1, kind: input, shape index: {}]   ;;  %s175_s2 = inlined_call_operand.vmem [shape: f32[1,96], index: 2, kind: input, shape index: {}]   ;;  %s176_s0 = inlined_call_operand.vmem [shape: f32[16,32], index: 0, kind: input, shape index: {}]   ;;  %s177_s3 = inlined_call_operand.vmem [shape: f32[16,96], index: 3, kind: output, shape index: {}]  }
   0x1   :  { %99 = vmatprep.subr.bf16.mxu0 %v109_v0  ;;  %v34_v1 = vld [vmem:[%s174_s1] sm:$0xff]  ;;  %v35_v2 = vld [vmem:[%s174_s1 + $0x8] sm:$0xff]  ;;  %v36_v3 = vld [vmem:[%s174_s1 + $0x10] sm:$0xff]  ;;  %103 = vmatprep.mubr.msk.bf16.mxu0 %vm110_vm0, %v109_v0 }
   0x2   :  { %v38_v4 = vpack.c.bf16 %v35_v2, %v34_v1  ;;  %v37_v5 = vld [vmem:[%s174_s1 + $0x18] sm:$0xff]  ;;  %v94_v6 = vld [vmem:[%s175_s2] ss:$0 sm:$0xff]  ;;  %v32_v9 = vld [vmem:[%s176_s0 + $0x8] sm:$0xff] }
   0x3   :  { %v39_v7 = vpack.c.bf16 %v37_v5, %v36_v3  ;;  %v31_v8 = vld [vmem:[%s176_s0] sm:$0xff]  ;;  %27 = vst.msk [vmem:[%s177_s3] sm:$0xff] %vm26_vm1, %v94_v6  ;;  %28 = vst.msk [vmem:[%s177_s3 + $0x8] sm:$0xff] %vm26_vm1, %v94_v6 }
   0x4   :  { %100 = vmatpush3.bf16.msra.mxu0 %v38_v4  ;;  %v33_v10 = vpack.c.bf16 %v32_v9, %v31_v8 }
   0x5   :  { %101 = vmatprep.subr.bf16.mxu0 %v109_v0 }
   0x8   :  { %102 = vmatpush3.bf16.msra.mxu0 %v39_v7 }
   0xa   :  { %v29_v11 = vld [vmem:[%s177_s3] sm:$0xff]  ;;  %v30_v13 = vld [vmem:[%s177_s3 + $0x8] sm:$0xff] }
   0xb   :  { %104 = vmatmul.mubr.msk.bf16.vlgmr.msra.gmra.mrb[0].mxu0 %vm40_vm2, %v33_v10 }
  0xde   :  { %v78_v12 = vpop.f32.mrb[0].mxu0 }
  0xdf   :  { %v85_v14 = vadd.f32 %v78_v12, %v29_v11  ;;  %v105_v15 = vpop.f32.mrb[1].mxu0 }
  0xe0   :  { %v81_v16 = vpop.f32.mrb[2].mxu0 }
  0xe1   :  { %88 = vst.msk [vmem:[%s177_s3] sm:$0xff] %vm26_vm1, %v85_v14  ;;  %v86_v17 = vadd.f32 %v81_v16, %v30_v13  ;;  %v106_v18 = vpop.f32.mrb[3].mxu0 }
  0xe3   :  { %89 = vst.msk [vmem:[%s177_s3 + $0x8] sm:$0xff] %vm26_vm1, %v86_v17 }

// kernel: transformer_forward.11
= control target key start
LH: loop header
LB: loop body
LE: loop exit
PB: predicated region body
PF: predicated region fallthrough
CT: control target
= control target key end

     0   :  { %vm28_vm0 = vcmask 261120   ;;  %v181_v0 = vmov 0.0   ;;  %vm182_vm1 = vmmov 0   ;;  %s292_s6 = inlined_call_operand.vmem [shape: f32[16,32], index: 6, kind: output, shape index: {}]   ;;  %s293_s1 = inlined_call_operand.vmem [shape: f32[32,32], index: 1, kind: input, shape index: {}]   ;;  %s294_s0 = inlined_call_operand.vmem [shape: f32[16,32], index: 0, kind: input, shape index: {}]   ;;  %s295_s2 = inlined_call_operand.vmem [shape: f32[1,32], index: 2, kind: input, shape index: {}]   ;;  %s296_s3 = inlined_call_operand.vmem [shape: f32[16,32], index: 3, kind: input, shape index: {}]   ;;  %s297_s4 = inlined_call_operand.vmem [shape: f32[1,32], index: 4, kind: input, shape index: {}]   ;;  %s298_s5 = inlined_call_operand.vmem [shape: f32[1,32], index: 5, kind: input, shape index: {}]  }
   0x1   :  { %29 = vst.msk [vmem:[%s292_s6] sm:$0xff] %vm28_vm0, %v181_v0  ;;  %30 = vst.msk [vmem:[%s292_s6 + $0x8] sm:$0xff] %vm28_vm0, %v181_v0  ;;  %167 = vmatprep.subr.bf16.mxu0 %v181_v0  ;;  %v36_v1 = vld [vmem:[%s293_s1] sm:$0xff]  ;;  %v37_v2 = vld [vmem:[%s293_s1 + $0x8] sm:$0xff]  ;;  %171 = vmatprep.mubr.msk.bf16.mxu0 %vm182_vm1, %v181_v0 }
   0x2   :  { %v38_v3 = vld [vmem:[%s293_s1 + $0x10] sm:$0xff]  ;;  %v40_v4 = vpack.c.bf16 %v37_v2, %v36_v1  ;;  %v39_v5 = vld [vmem:[%s293_s1 + $0x18] sm:$0xff]  ;;  %v33_v7 = vld [vmem:[%s294_s0] sm:$0xff] }
   0x3   :  { %v41_v6 = vpack.c.bf16 %v39_v5, %v38_v3  ;;  %v34_v8 = vld [vmem:[%s294_s0 + $0x8] sm:$0xff]  ;;  %v161_v18 = vld [vmem:[%s295_s2] ss:$0 sm:$0xff] }
   0x4   :  { %168 = vmatpush3.bf16.msra.mxu0 %v40_v4  ;;  %v35_v9 = vpack.c.bf16 %v34_v8, %v33_v7  ;;  %v105_v20 = vld [vmem:[%s296_s3] sm:$0xff]  ;;  %v106_v23 = vld [vmem:[%s296_s3 + $0x8] sm:$0xff] }
   0x5   :  { %169 = vmatprep.subr.bf16.mxu0 %v181_v0  ;;  %v162_v46 = vld [vmem:[%s297_s4] ss:$0 sm:$0xff] }
   0x6   :  { %v163_v48 = vld [vmem:[%s298_s5] ss:$0 sm:$0xff] }
   0x8   :  { %170 = vmatpush3.bf16.msra.mxu0 %v41_v6  ;;  %v31_v10 = vld [vmem:[%s292_s6] sm:$0xff]  ;;  %v32_v12 = vld [vmem:[%s292_s6 + $0x8] sm:$0xff] }
   0xb   :  { %172 = vmatmul.mubr.msk.bf16.vlgmr.msra.gmra.mrb[0].mxu0 %vm28_vm0, %v35_v9 }
  0xde   :  { %v80_v11 = vpop.f32.mrb[0].mxu0 }
  0xdf   :  { %v87_v13 = vadd.f32 %v80_v11, %v31_v10  ;;  %v173_v14 = vpop.f32.mrb[1].mxu0 }
  0xe0   :  { %v83_v15 = vpop.f32.mrb[2].mxu0 }
  0xe1   :  { %89 = vst.msk [vmem:[%s292_s6] sm:$0xff] %vm28_vm0, %v87_v13  ;;  %v88_v16 = vadd.f32 %v83_v15, %v32_v12  ;;  %v174_v17 = vpop.f32.mrb[3].mxu0 }
  0xe3   :  { %90 = vst.msk [vmem:[%s292_s6 + $0x8] sm:$0xff] %vm28_vm0, %v88_v16 }
  0xe8   :  { %v94_v19 = vld [vmem:[%s292_s6] sm:$0xff] }
  0xe9   :  { %v103_v21 = vadd.f32 %v161_v18, %v94_v19 }
  0xea   :  { %v95_v22 = vld [vmem:[%s292_s6 + $0x8] sm:$0xff] }
  0xeb   :  { %v107_v24 = vadd.f32 %v105_v20, %v103_v21  ;;  %v104_v25 = vadd.f32 %v161_v18, %v95_v22 }
  0xed   :  { %v111_v26 = vsel %vm28_vm0, %v107_v24, 0.0  ;;  %v108_v27 = vadd.f32 %v106_v23, %v104_v25 }
  0xee   :  { %112 = vadd.xlane.f32.xlu0 %v111_v26 }
  0xef   :  { %v114_v28 = vsel %vm28_vm0, %v108_v27, 0.0 }
  0xf2   :  { %115 = vadd.xlane.f32.xlu0 %v114_v28 }
 0x17b   :  { %v113_v29 = vpop.xlane.xlu0 %112 }
 0x17c   :  { %v118_v30 = vmul.f32 0.03125, %v113_v29 }
 0x17e   :  { %v120_v31 = vsub.f32 %v107_v24, %v118_v30 }
 0x17f   :  { %v116_v32 = vpop.xlane.xlu0 %115 }
 0x180   :  { %v119_v33 = vmul.f32 0.03125, %v116_v32  ;;  %v122_v34 = vmul.f32 %v120_v31, %v120_v31 }
 0x182   :  { %v121_v35 = vsub.f32 %v108_v27, %v119_v33  ;;  %v124_v36 = vsel %vm28_vm0, %v122_v34, 0.0 }
 0x183   :  { %125 = vadd.xlane.f32.xlu1 %v124_v36 }
 0x184   :  { %v123_v37 = vmul.f32 %v121_v35, %v121_v35 }
 0x186   :  { %v127_v38 = vsel %vm28_vm0, %v123_v37, 0.0 }
 0x187   :  { %128 = vadd.xlane.f32.xlu1 %v127_v38 }
 0x210   :  { %v126_v39 = vpop.xlane.xlu1 %125 }
 0x211   :  { %v130_v40 = vmul.f32 0.03125, %v126_v39 }
 0x213   :  { %v132_v41 = vadd.f32 1e-05, %v130_v40 }
 0x214   :  { %v129_v42 = vpop.xlane.xlu1 %128 }
 0x215   :  { %177 = vrsqrt.f32 %v132_v41  ;;  %v131_v43 = vmul.f32 0.03125, %v129_v42 }
 0x217   :  { %v133_v44 = vadd.f32 1e-05, %v131_v43 }
 0x219   :  { %179 = vrsqrt.f32 %v133_v44 }
 0x21f   :  { %v178_v45 = vpop.eup %177 }
 0x220   :  { %v136_v47 = vmul.f32 %v178_v45, %v120_v31 }
 0x222   :  { %v144_v49 = vmul.f32 %v162_v46, %v136_v47 }
 0x223   :  { %v180_v50 = vpop.eup %179 }
 0x224   :  { %v152_v51 = vadd.f32 %v163_v48, %v144_v49  ;;  %v137_v52 = vmul.f32 %v180_v50, %v121_v35 }
 0x226   :  { %154 = vst.msk [vmem:[%s292_s6] sm:$0xff] %vm28_vm0, %v152_v51  ;;  %v145_v53 = vmul.f32 %v162_v46, %v137_v52 }
 0x228   :  { %v153_v54 = vadd.f32 %v163_v48, %v145_v53 }
 0x22a   :  { %155 = vst.msk [vmem:[%s292_s6 + $0x8] sm:$0xff] %vm28_vm0, %v153_v54 }

// kernel: transformer_forward.12
= control target key start
LH: loop header
LB: loop body
LE: loop exit
PB: predicated region body
PF: predicated region fallthrough
CT: control target
= control target key end

     0   :  { %v304_v0 = vmov 0.0   ;;  %vm305_vm0 = vmmov 0   ;;  %vm34_vm1 = vcmask 261120   ;;  %s476_s1 = inlined_call_operand.vmem [shape: f32[32,128], index: 1, kind: input, shape index: {}]   ;;  %s477_s3 = inlined_call_operand.vmem [shape: f32[128,32], index: 3, kind: input, shape index: {}]   ;;  %s478_s0 = inlined_call_operand.vmem [shape: f32[16,32], index: 0, kind: input, shape index: {}, may-alias: {0,5}]   ;;  %s479_s8 = inlined_call_operand.vmem [shape: f32[16,32], index: 8, kind: output, shape index: {}]   ;;  %s480_s2 = inlined_call_operand.vmem [shape: f32[1,128], index: 2, kind: input, shape index: {}]   ;;  %s481_s4 = inlined_call_operand.vmem [shape: f32[1,32], index: 4, kind: input, shape index: {}]   ;;  %s482_s5 = inlined_call_operand.vmem [shape: f32[16,32], index: 5, kind: input, shape index: {}, may-alias: {0,5}]   ;;  %s483_s6 = inlined_call_operand.vmem [shape: f32[1,32], index: 6, kind: input, shape index: {}]   ;;  %s484_s7 = inlined_call_operand.vmem [shape: f32[1,32], index: 7, kind: input, shape index: {}]  }
   0x1   :  { %266 = vmatprep.subr.bf16.mxu0 %v304_v0  ;;  %v40_v1 = vld [vmem:[%s476_s1] sm:$0xff]  ;;  %v41_v2 = vld [vmem:[%s476_s1 + $0x8] sm:$0xff]  ;;  %v42_v3 = vld [vmem:[%s476_s1 + $0x10] sm:$0xff]  ;;  %270 = vmatprep.mubr.msk.bf16.mxu0 %vm305_vm0, %v304_v0  ;;  %35 = vst.msk [vmem:[%s479_s8] sm:$0xff] %vm34_vm1, %v304_v0 }
   0x2   :  { %v44_v4 = vpack.c.bf16 %v41_v2, %v40_v1  ;;  %v43_v5 = vld [vmem:[%s476_s1 + $0x18] sm:$0xff]  ;;  %274 = vmatprep.subr.bf16.mxu1 %v304_v0  ;;  %290 = vmatprep.mubr.msk.bf16.mxu1 %vm305_vm0, %v304_v0  ;;  %v111_v6 = vld [vmem:[%s477_s3] sm:$0xff]  ;;  %v112_v7 = vld [vmem:[%s477_s3 + $0x8] sm:$0xff]  ;;  %36 = vst.msk [vmem:[%s479_s8 + $0x8] sm:$0xff] %vm34_vm1, %v304_v0 }
   0x3   :  { %v113_v8 = vld [vmem:[%s477_s3 + $0x10] sm:$0xff]  ;;  %v45_v9 = vpack.c.bf16 %v43_v5, %v42_v3  ;;  %v37_v10 = vld [vmem:[%s478_s0] sm:$0xff]  ;;  %v38_v11 = vld [vmem:[%s478_s0 + $0x8] sm:$0xff]  ;;  %v127_v12 = vpack.c.bf16 %v112_v7, %v111_v6 }
   0x4   :  { %267 = vmatpush3.bf16.msra.mxu0 %v44_v4  ;;  %v114_v13 = vld [vmem:[%s477_s3 + $0x18] sm:$0xff]  ;;  %v39_v15 = vpack.c.bf16 %v38_v11, %v37_v10  ;;  %v115_v16 = vld [vmem:[%s477_s3 + $0x20] sm:$0xff]  ;;  %v116_v17 = vld [vmem:[%s477_s3 + $0x28] sm:$0xff] }
   0x5   :  { %268 = vmatprep.subr.bf16.mxu0 %v304_v0  ;;  %275 = vmatpush3.bf16.msra.mxu1 %v127_v12  ;;  %v128_v14 = vpack.c.bf16 %v114_v13, %v113_v8  ;;  %v129_v18 = vpack.c.bf16 %v116_v17, %v115_v16  ;;  %v117_v19 = vld [vmem:[%s477_s3 + $0x30] sm:$0xff]  ;;  %v118_v20 = vld [vmem:[%s477_s3 + $0x38] sm:$0xff]  ;;  %v119_v22 = vld [vmem:[%s477_s3 + $0x40] sm:$0xff] }
   0x6   :  { %276 = vmatprep.subr.bf16.mxu1 %v304_v0  ;;  %v130_v21 = vpack.c.bf16 %v118_v20, %v117_v19  ;;  %v120_v23 = vld [vmem:[%s477_s3 + $0x48] sm:$0xff]  ;;  %v121_v25 = vld [vmem:[%s477_s3 + $0x50] sm:$0xff]  ;;  %v122_v26 = vld [vmem:[%s477_s3 + $0x58] sm:$0xff] }
   0x7   :  { %v131_v24 = vpack.c.bf16 %v120_v23, %v119_v22  ;;  %v132_v27 = vpack.c.bf16 %v122_v26, %v121_v25  ;;  %v123_v28 = vld [vmem:[%s477_s3 + $0x60] sm:$0xff]  ;;  %v124_v29 = vld [vmem:[%s477_s3 + $0x68] sm:$0xff]  ;;  %v125_v31 = vld [vmem:[%s477_s3 + $0x70] sm:$0xff] }
   0x8   :  { %269 = vmatpush3.bf16.msra.mxu0 %v45_v9  ;;  %v133_v30 = vpack.c.bf16 %v124_v29, %v123_v28  ;;  %v126_v32 = vld [vmem:[%s477_s3 + $0x78] sm:$0xff]  ;;  %v249_v34 = vld [vmem:[%s480_s2] ss:$0 sm:$0xff]  ;;  %v195_v1 = vld [vmem:[%s482_s5 + $0x8] sm:$0xff] }
   0x9   :  { %277 = vmatpush3.bf16.msra.mxu1 %v128_v14  ;;  %v134_v33 = vpack.c.bf16 %v126_v32, %v125_v31  ;;  %v108_v52 = vld [vmem:[%s479_s8] sm:$0xff]  ;;  %v109_v54 = vld [vmem:[%s479_s8 + $0x8] sm:$0xff] }
   0xa   :  { %278 = vmatprep.subr.bf16.mxu1 %v304_v0  ;;  %v251_v60 = vld [vmem:[%s481_s4] ss:$0 sm:$0xff] }
   0xb   :  { %271 = vmatmul.mubr.msk.bf16.vlgmr.msra.gmra.mrb[0].mxu0 %vm34_vm1, %v39_v15  ;;  %v194_v62 = vld [vmem:[%s482_s5] sm:$0xff] }
   0xc   :  { %v253_v26 = vld [vmem:[%s484_s7] ss:$0 sm:$0xff] }
   0xd   :  { %279 = vmatpush3.bf16.msra.mxu1 %v129_v18 }
   0xe   :  { %280 = vmatprep.subr.bf16.mxu1 %v304_v0 }
  0x11   :  { %281 = vmatpush3.bf16.msra.mxu1 %v130_v21 }
  0x12   :  { %282 = vmatprep.subr.bf16.mxu1 %v304_v0 }
  0x15   :  { %283 = vmatpush3.bf16.msra.mxu1 %v131_v24  ;;  %v252_v24 = vld [vmem:[%s483_s6] ss:$0 sm:$0xff] }
  0x16   :  { %284 = vmatprep.subr.bf16.mxu1 %v304_v0 }
  0x19   :  { %285 = vmatpush3.bf16.msra.mxu1 %v132_v27 }
  0x1a   :  { %286 = vmatprep.subr.bf16.mxu1 %v304_v0 }
  0x1d   :  { %287 = vmatpush3.bf16.msra.mxu1 %v133_v30 }
  0x1e   :  { %288 = vmatprep.subr.bf16.mxu1 %v304_v0 }
  0x21   :  { %289 = vmatpush3.bf16.msra.mxu1 %v134_v33 }
  0xde   :  { %v91_v35 = vpop.f32.mrb[0].mxu0 }
  0xdf   :  { %v92_v36 = vadd.f32 %v249_v34, %v91_v35  ;;  %v272_v37 = vpop.f32.mrb[1].mxu0 }
  0xe0   :  { %v94_v38 = vpop.f32.mrb[2].mxu0 }
  0xe1   :  { %v100_v39 = vmul.f32 0.70710677, %v92_v36  ;;  %v95_v40 = vadd.f32 %v249_v34, %v94_v38  ;;  %v273_v41 = vpop.f32.mrb[3].mxu0  ;;  %v98_v46 = vmul.f32 0.5, %v92_v36 }
  0xe3   :  { %296 = verf.f32 %v100_v39  ;;  %v101_v42 = vmul.f32 0.70710677, %v95_v40  ;;  %v99_v47 = vmul.f32 0.5, %v95_v40 }
  0xe5   :  { %298 = verf.f32 %v101_v42 }
  0xed   :  { %v297_v43 = vpop.eup %296 }
  0xee   :  { %v104_v44 = vadd.f32 1.0, %v297_v43 }
  0xef   :  { %v299_v45 = vpop.eup %298 }
  0xf0   :  { %v105_v48 = vadd.f32 1.0, %v299_v45  ;;  %v106_v49 = vmul.f32 %v104_v44, %v98_v46 }
  0xf2   :  { %v107_v50 = vmul.f32 %v105_v48, %v99_v47 }
  0xf4   :  { %v110_v51 = vpack.c.bf16 %v107_v50, %v106_v49 }
  0xf6   :  { %291 = vmatmul.mubr.bf16.vlgmr.msra.gmra.mrb[0].mxu1 %v110_v51 }
 0x1c9   :  { %v169_v53 = vpop.f32.mrb[0].mxu1 }
 0x1ca   :  { %v176_v55 = vadd.f32 %v169_v53, %v108_v52  ;;  %v292_v56 = vpop.f32.mrb[1].mxu1 }
 0x1cb   :  { %v172_v57 = vpop.f32.mrb[2].mxu1 }
 0x1cc   :  { %178 = vst.msk [vmem:[%s479_s8] sm:$0xff] %vm34_vm1, %v176_v55  ;;  %v177_v58 = vadd.f32 %v172_v57, %v109_v54  ;;  %v293_v59 = vpop.f32.mrb[3].mxu1 }
 0x1ce   :  { %179 = vst.msk [vmem:[%s479_s8 + $0x8] sm:$0xff] %vm34_vm1, %v177_v58 }
 0x1d3   :  { %v183_v61 = vld [vmem:[%s479_s8] sm:$0xff] }
 0x1d4   :  { %v192_v63 = vadd.f32 %v251_v60, %v183_v61 }
 0x1d5   :  { %v184_v0 = vld [vmem:[%s479_s8 + $0x8] sm:$0xff] }
 0x1d6   :  { %v196_v2 = vadd.f32 %v194_v62, %v192_v63  ;;  %v193_v3 = vadd.f32 %v251_v60, %v184_v0 }
 0x1d8   :  { %v200_v4 = vsel %vm34_vm1, %v196_v2, 0.0  ;;  %v197_v5 = vadd.f32 %v195_v1, %v193_v3 }
 0x1d9   :  { %201 = vadd.xlane.f32.xlu0 %v200_v4 }
 0x1da   :  { %v203_v6 = vsel %vm34_vm1, %v197_v5, 0.0 }
 0x1dd   :  { %204 = vadd.xlane.f32.xlu0 %v203_v6 }
 0x266   :  { %v202_v7 = vpop.xlane.xlu0 %201 }
 0x267   :  { %v207_v8 = vmul.f32 0.03125, %v202_v7 }
 0x269   :  { %v209_v9 = vsub.f32 %v196_v2, %v207_v8 }
 0x26a   :  { %v205_v10 = vpop.xlane.xlu0 %204 }
 0x26b   :  { %v208_v11 = vmul.f32 0.03125, %v205_v10  ;;  %v211_v12 = vmul.f32 %v209_v9, %v209_v9 }
 0x26d   :  { %v210_v13 = vsub.f32 %v197_v5, %v208_v11  ;;  %v213_v14 = vsel %vm34_vm1, %v211_v12, 0.0 }
 0x26e   :  { %214 = vadd.xlane.f32.xlu1 %v213_v14 }
 0x26f   :  { %v212_v15 = vmul.f32 %v210_v13, %v210_v13 }
 0x271   :  { %v216_v16 = vsel %vm34_vm1, %v212_v15, 0.0 }
 0x272   :  { %217 = vadd.xlane.f32.xlu1 %v216_v16 }
 0x2fb   :  { %v215_v17 = vpop.xlane.xlu1 %214 }
 0x2fc   :  { %v219_v18 = vmul.f32 0.03125, %v215_v17 }
 0x2fe   :  { %v221_v19 = vadd.f32 1e-05, %v219_v18 }
 0x2ff   :  { %v218_v20 = vpop.xlane.xlu1 %217 }
 0x300   :  { %300 = vrsqrt.f32 %v221_v19  ;;  %v220_v21 = vmul.f32 0.03125, %v218_v20 }
 0x302   :  { %v222_v22 = vadd.f32 1e-05, %v220_v21 }
 0x304   :  { %302 = vrsqrt.f32 %v222_v22 }
 0x30a   :  { %v301_v23 = vpop.eup %300 }
 0x30b   :  { %v225_v25 = vmul.f32 %v301_v23, %v209_v9 }
 0x30d   :  { %v233_v27 = vmul.f32 %v252_v24, %v225_v25 }
 0x30e   :  { %v303_v28 = vpop.eup %302 }
 0x30f   :  { %v241_v29 = vadd.f32 %v253_v26, %v233_v27  ;;  %v226_v30 = vmul.f32 %v303_v28, %v210_v13 }
 0x311   :  { %243 = vst.msk [vmem:[%s479_s8] sm:$0xff] %vm34_vm1, %v241_v29  ;;  %v234_v31 = vmul.f32 %v252_v24, %v226_v30 }
 0x313   :  { %v242_v32 = vadd.f32 %v253_v26, %v234_v31 }
 0x315   :  { %244 = vst.msk [vmem:[%s479_s8 + $0x8] sm:$0xff] %vm34_vm1, %v242_v32 }

// kernel: transformer_forward.17
= control target key start
LH: loop header
LB: loop body
LE: loop exit
PB: predicated region body
PF: predicated region fallthrough
CT: control target
= control target key end

     0   :  { %v107_v0 = vmov 0.0   ;;  %vm108_vm0 = vmmov 0   ;;  %vm39_vm1 = vcmask 261120   ;;  %s156_s1 = inlined_call_operand.vmem [shape: f32[32,128], index: 1, kind: input, shape index: {}]   ;;  %s157_s0 = inlined_call_operand.vmem [shape: f32[16,32], index: 0, kind: input, shape index: {}]   ;;  %s158_s2 = inlined_call_operand.vmem [shape: f32[1,128], index: 2, kind: input, shape index: {}]   ;;  %s159_s3 = inlined_call_operand.vmem [shape: f32[16,128], index: 3, kind: output, shape index: {}]  }
   0x1   :  { %97 = vmatprep.subr.bf16.mxu0 %v107_v0  ;;  %v33_v1 = vld [vmem:[%s156_s1] sm:$0xff]  ;;  %v34_v2 = vld [vmem:[%s156_s1 + $0x8] sm:$0xff]  ;;  %v35_v3 = vld [vmem:[%s156_s1 + $0x10] sm:$0xff]  ;;  %101 = vmatprep.mubr.msk.bf16.mxu0 %vm108_vm0, %v107_v0 }
   0x2   :  { %v37_v4 = vpack.c.bf16 %v34_v2, %v33_v1  ;;  %v36_v5 = vld [vmem:[%s156_s1 + $0x18] sm:$0xff]  ;;  %v30_v7 = vld [vmem:[%s157_s0] sm:$0xff]  ;;  %v31_v8 = vld [vmem:[%s157_s0 + $0x8] sm:$0xff] }
   0x3   :  { %v38_v6 = vpack.c.bf16 %v36_v5, %v35_v3  ;;  %v32_v9 = vpack.c.bf16 %v31_v8, %v30_v7  ;;  %v92_v10 = vld [vmem:[%s158_s2] ss:$0 sm:$0xff] }
   0x4   :  { %98 = vmatpush3.bf16.msra.mxu0 %v37_v4 }
   0x5   :  { %99 = vmatprep.subr.bf16.mxu0 %v107_v0 }
   0x8   :  { %100 = vmatpush3.bf16.msra.mxu0 %v38_v6 }
   0xb   :  { %102 = vmatmul.mubr.msk.bf16.vlgmr.msra.gmra.mrb[0].mxu0 %vm39_vm1, %v32_v9 }
  0xde   :  { %v77_v11 = vpop.f32.mrb[0].mxu0 }
  0xdf   :  { %v84_v12 = vadd.f32 %v92_v10, %v77_v11  ;;  %v103_v13 = vpop.f32.mrb[1].mxu0 }
  0xe0   :  { %v80_v14 = vpop.f32.mrb[2].mxu0 }
  0xe1   :  { %86 = vst [vmem:[%s159_s3] sm:$0xff] %v84_v12  ;;  %v85_v15 = vadd.f32 %v92_v10, %v80_v14  ;;  %v104_v16 = vpop.f32.mrb[3].mxu0 }
  0xe3   :  { %87 = vst [vmem:[%s159_s3 + $0x8] sm:$0xff] %v85_v15 }

// kernel: transformer_forward.10
= control target key start
LH: loop header
LB: loop body
LE: loop exit
PB: predicated region body
PF: predicated region fallthrough
CT: control target
= control target key end

     0   :  { %s1142_s9 = smov 0   ;;  %s1144_s10 = smov 0   ;;  %s1321_s0 = inlined_call_operand.vmem [shape: f32[2,8,96], index: 0, kind: input, shape index: {}, may-alias: {0,1}]   ;;  %s1322_s1 = inlined_call_operand.vmem [shape: f32[2,8,96], index: 1, kind: input, shape index: {}, may-alias: {0,1}]   ;;  %s1323_s2 = inlined_call_operand.vmem [shape: f32[2,8,32], index: 2, kind: output, shape index: {}]  }
   0x1   :  { %s1146_s11 = smov 0  }
   0x2 LB: > { %s31_s12 = sadd.s32 1, %s1100_s10  ;;  %p928_p0 = scmp.ge.s32.totalorder %s1104_s11, 1  ;;  %s1104_s11 = sphi %s1146_s11, %s12_s11   ;;  %s1100_s10 = sphi %s1144_s10, %s1325_s10   ;;  %s1096_s9 = sphi %s1142_s9, %s1324_s9  }
   0x3   : > { %p33_p1 = scmp.ge.s32.totalorder %s31_s12, 2  ;;  %p151_p2 = scmp.lt.s32.totalorder %s1104_s11, 3 }
   0x5   : > { %s1327_s12 = smov (%p33_p1, %s31_s12), 0  ;;  %p152_p3 = pnand %p928_p0, %p151_p2 }
   0x6   : > { %p184_p4 = scmp.lt.s32.totalorder (!%p152_p3), %s1096_s9, 1  ;;  %v1106_v0 = vmov (!%p152_p3), 0.0   ;;  %vm1107_vm0 = vmmov (!%p152_p3), 0   ;;  %s1108_s17 = smov (!%p152_p3), 96   ;;  %vm223_vm1 = vcmask (!%p152_p3), 64512   ;;  %vm210_vm2 = vcmask (!%p152_p3), 31744  }
   0x7   : > { %155 = sbr.rel (%p152_p3) target bundleno = 1532 (0x5fc), region = 28  ;;  %958 = vmatprep.subr.bf16.mxu0 (!%p152_p3), %v1106_v0  ;;  %960 = vmatprep.mubr.msk.bf16.mxu0 (!%p152_p3), %vm1107_vm0, %v1106_v0  ;;  %v1109_v8 = vmov (!%p152_p3), -inf   ;;  %212 = vst.msk [vmem:[#allocation3] sm:$0xff] (!%p152_p3), %vm210_vm2, %v1106_v0  ;;  %v1110_v14 = vmov (!%p152_p3), 0   ;;  %vm292_vm3 = vcmask (!%p152_p3), 7168   ;;  %s1111_s21 = smov (!%p152_p3), 64  }
   0x8   : > { %964 = vmatprep.subr.bf16.mxu1 (!%p152_p3), %v1106_v0  ;;  %966 = vmatprep.mubr.msk.bf16.mxu1 (!%p152_p3), %vm1107_vm0, %v1106_v0  ;;  %211 = vst.msk [vmem:[#allocation2] sm:$0xff] (!%p152_p3), %vm210_vm2, %v1109_v8  ;;  %s1112_s22 = smov (!%p152_p3), 88   ;;  %s1113_s23 = smov (!%p152_p3), 120   ;;  %vm307_vm4 = vcmask (!%p152_p3), 1043456   ;;  %v1118_v52 = vmov (!%p152_p3), 1   ;;  %v1119_v55 = vmov (!%p152_p3), 2  }
   0x9   : > { %1051 = vset.pattern.permute.xlu1 (!%p152_p3), %v1110_v14  ;;  %s1114_s24 = smov (!%p152_p3), 80   ;;  %s1115_s25 = smov (!%p152_p3), 112   ;;  %1052 = vset.pattern.permute.xlu0 (!%p152_p3), %v1118_v52  ;;  %vm433_vm5 = vcmask (!%p152_p3), 15368   ;;  %v1120_v59 = vmov (!%p152_p3), 3   ;;  %vm578_vm6 = vcmask (!%p152_p3), 23568   ;;  %vm723_vm7 = vcmask (!%p152_p3), 31768  }
   0xa   : > { %s1116_s26 = smov (!%p152_p3), 72   ;;  %s1117_s27 = smov (!%p152_p3), 104   ;;  %vm213_vm8 = vcmask (!%p152_p3), 261120   ;;  %vm496_vm9 = vcmask (!%p152_p3), 130112   ;;  %vm641_vm10 = vcmask (!%p152_p3), 195712   ;;  %vm786_vm11 = vcmask (!%p152_p3), 261312  }
   0xb   : > { %s1121_s28 = smov (!%p152_p3), 56   ;;  %s1122_s29 = smov (!%p152_p3), 48   ;;  %214 = vst.msk [vmem:[#allocation4] sm:$0xff] (!%p152_p3), %vm213_vm8, %v1106_v0 }
   0xc   : > { %s1123_s30 = smov (!%p152_p3), 40   ;;  %s1124_s3 = smov (!%p152_p3), 8  }
   0xd   : > { %s1125_s4 = smov (!%p152_p3), 16   ;;  %s1126_s5 = smov (!%p152_p3), 24  }
   0xe   : > { %s1329_s9 = smov (!%p184_p4, %s1096_s9), 1 }
   0xf   : > { %s1166_s13 = sshll.u32 %s1329_s9, 3  ;;  %v1187_v15 = vld [vmem:[#allocation2] sm:$0xff] }
  0x10   : > { %s197_s16 = scalar_lea.vmem %s1322_s1, %s1166_s13  ;;  %s190_s20 = scalar_lea.vmem %s1321_s0, %s1166_s13 }
  0x11   : > { %v218_v1 = vld [vmem:[%s197_s16] sm:$0xff]  ;;  %s204_s8 = scalar_lea.vmem %s1323_s2, %s1166_s13 }
  0x12   : > { %v1172_v2 = vpack.c.bf16 %v218_v1, %v218_v1  ;;  %v215_v3 = vld [vmem:[%s190_s20] sm:$0xff] }
  0x13   : > { %v216_v6 = vmul.f32 0.35355338, %v215_v3 }
  0x14   : > { %221 = vrot.lane.b32.xlu0 %v1172_v2, %s1108_s17 }
  0x15   : > { %v217_v7 = vpack.c.bf16 %v216_v6, %v216_v6 }
  0x86   : > { %v222_v4 = vpop.permute.xlu0 %221 }
  0x87   : > { %v228_v5 = vsel %vm223_vm1, %v222_v4, 0 }
  0x88   : > { %959 = vmatpush3.bf16.xpose.msra.mxu0 %v228_v5 }
  0x89   : > { %976 = vmatprep.subr.bf16.mxu0 %v1106_v0 }
  0x8f   : > { %961 = vmatmul.mubr.msk.bf16.vlgmr.msra.gmra.mrb[0].mxu0 %vm223_vm1, %v217_v7 }
  0x90   : > { %978 = vmatprep.mubr.msk.bf16.mxu0 %vm1107_vm0, %v1106_v0 }
 0x162   : > { %v264_v9 = vpop.f32.mrb[0].mxu0 }
 0x163   : > { %v962_v10 = vpop.f32.mrb[1].mxu0  ;;  %v271_v11 = vsel %vm223_vm1, %v264_v9, -inf }
 0x164   : > { %272 = vmax.xlane.f32.xlu0 %v271_v11  ;;  %v267_v12 = vpop.f32.mrb[2].mxu0 }
 0x165   : > { %v963_v13 = vpop.f32.mrb[3].mxu0 }
 0x1f1   : > { %v273_v16 = vpop.xlane.xlu0 %272 }
 0x1f2   : > { %v1190_v17 = vmax.f32 %v1187_v15, %v273_v16 }
 0x1f4   : > { %v275_v18 = vsub.f32 %v1187_v15, %v1190_v17  ;;  %353 = vst.msk [vmem:[#allocation2] sm:$0xff] %vm292_vm3, %v1190_v17  ;;  %280 = vperm.xlu1 %1051, %v1190_v17  }
 0x1f6   : > { %v276_v1 = vmul.f32 1.442695, %v275_v18 }
 0x1f8   : > { %302 = vrot.lane.b32.xlu1 %v1172_v2, %s1111_s21 }
 0x1f9   : > { %1053 = vset.pattern.permute.xlu1 %v1119_v55 }
 0x1fb   : > { %v411_v57 = vld [vmem:[#allocation2] sm:$0xff] }
 0x1fc   : > { %363 = vrot.lane.b32.xlu1 %v1172_v2, %s1112_s22 }
 0x200   : > { %360 = vrot.lane.b32.xlu1 %v217_v7, %s1113_s23 }
 0x204   : > { %508 = vrot.lane.b32.xlu1 %v1172_v2, %s1114_s24 }
 0x208   : > { %505 = vrot.lane.b32.xlu1 %v217_v7, %s1115_s25 }
 0x20c   : > { %653 = vrot.lane.b32.xlu1 %v1172_v2, %s1116_s26 }
 0x210   : > { %650 = vrot.lane.b32.xlu1 %v217_v7, %s1117_s27 }
 0x273   : > { %v281_v19 = vpop.permute.xlu1 %280 }
 0x274   : > { %v283_v20 = vsub.f32 %v264_v9, %v281_v19 }
 0x276   : > { %v284_v21 = vmul.f32 1.442695, %v283_v20 }
 0x277   : > { %v303_v22 = vpop.permute.xlu1 %302 }
 0x278   : > { %1064 = vpow2.f32 %v284_v21  ;;  %v309_v23 = vsel %vm307_vm4, %v303_v22, 0 }
 0x279   : > { %965 = vmatpush3.bf16.msra.mxu1 %v309_v23  ;;  %1066 = vpow2.f32 %v276_v1 }
 0x27a   : > { %970 = vmatprep.subr.bf16.mxu1 %v1106_v0 }
 0x27b   : > { %v364_v24 = vpop.permute.xlu1 %363 }
 0x27c   : > { %v369_v27 = vsel %vm223_vm1, %v364_v24, 0 }
 0x27f   : > { %v361_v25 = vpop.permute.xlu1 %360 }
 0x282   : > { %v1203_v26 = vpop.eup %1064 }
 0x283   : > { %v301_v28 = vpack.c.bf16 %v1203_v26, %v1203_v26  ;;  %v509_v29 = vpop.permute.xlu1 %508  ;;  %v1258_v6 = vpop.eup %1066  ;;  %v288_v7 = vsel %vm223_vm1, %v1203_v26, 0.0 }
 0x284   : > { %v514_v31 = vsel %vm223_vm1, %v509_v29, 0 }
 0x285   : > { %967 = vmatmul.mubr.msk.bf16.vlgmr.msra.gmra.mrb[0].mxu1 %vm223_vm1, %v301_v28 }
 0x286   : > { %971 = vmatpush3.bf16.xpose.msra.mxu1 %v369_v27  ;;  %972 = vmatprep.mubr.msk.bf16.mxu1 %vm1107_vm0, %v1106_v0 }
 0x287   : > { %982 = vmatprep.subr.bf16.mxu1 %v1106_v0  ;;  %v506_v30 = vpop.permute.xlu1 %505 }
 0x28b   : > { %v654_v32 = vpop.permute.xlu1 %653 }
 0x28c   : > { %v659_v33 = vsel %vm223_vm1, %v654_v32, 0 }
 0x28d   : > { %973 = vmatmul.mubr.msk.bf16.vlgmr.msra.gmra.mrb[4].mxu1 %vm223_vm1, %v361_v25 }
 0x28e   : > { %983 = vmatpush3.bf16.xpose.msra.mxu1 %v514_v31  ;;  %984 = vmatprep.mubr.msk.bf16.mxu1 %vm1107_vm0, %v1106_v0  ;;  %v294_v31 = vld [vmem:[#allocation4] sm:$0xff] }
 0x28f   : > { %994 = vmatprep.subr.bf16.mxu1 %v1106_v0  ;;  %v651_v34 = vpop.permute.xlu1 %650 }
 0x295   : > { %985 = vmatmul.mubr.msk.bf16.vlgmr.msra.gmra.mrb[8].mxu1 %vm223_vm1, %v506_v30 }
 0x296   : > { %995 = vmatpush3.bf16.xpose.msra.mxu1 %v659_v33  ;;  %996 = vmatprep.mubr.msk.bf16.mxu1 %vm1107_vm0, %v1106_v0 }
 0x29d   : > { %997 = vmatmul.mubr.msk.bf16.vlgmr.msra.gmra.mrb[12].mxu1 %vm223_vm1, %v651_v34 }
 0x358   : > { %v1222_v35 = vpop.f32.mrb[0].mxu1 }
 0x359   : > { %v968_v36 = vpop.f32.mrb[1].mxu1 }
 0x35a   : > { %v348_v37 = vpop.f32.mrb[2].mxu1 }
 0x35b   : > { %v969_v38 = vpop.f32.mrb[3].mxu1 }
 0x360   : > { %v1224_v39 = vpop.f32.mrb[4].mxu1 }
 0x361   : > { %v974_v40 = vpop.f32.mrb[5].mxu1  ;;  %v412_v41 = vsel %vm223_vm1, %v1224_v39, -inf }
 0x362   : > { %413 = vmax.xlane.f32.xlu1 %v412_v41  ;;  %v408_v42 = vpop.f32.mrb[6].mxu1 }
 0x363   : > { %v975_v43 = vpop.f32.mrb[7].mxu1 }
 0x364   : > { %v286_v43 = vld [vmem:[#allocation3] sm:$0xff] }
 0x368   : > { %v1228_v44 = vpop.f32.mrb[8].mxu1 }
 0x369   : > { %v986_v45 = vpop.f32.mrb[9].mxu1  ;;  %v557_v46 = vsel %vm223_vm1, %v1228_v44, -inf }
 0x36a   : > { %v553_v47 = vpop.f32.mrb[10].mxu1  ;;  %558 = vmax.xlane.f32.xlu0 %v557_v46 }
 0x36b   : > { %v987_v48 = vpop.f32.mrb[11].mxu1 }
 0x370   : > { %v1232_v49 = vpop.f32.mrb[12].mxu1 }
 0x371   : > { %v702_v50 = vsel %vm223_vm1, %v1232_v49, -inf  ;;  %v998_v51 = vpop.f32.mrb[13].mxu1 }
 0x372   : > { %703 = vmax.xlane.f32.xlu0 %v702_v50  ;;  %v698_v53 = vpop.f32.mrb[14].mxu1 }
 0x373   : > { %v999_v54 = vpop.f32.mrb[15].mxu1 }
 0x3ef   : > { %v414_v56 = vpop.xlane.xlu1 %413 }
 0x3f0   : > { %v415_v58 = vmax.f32 %v411_v57, %v414_v56 }
 0x3f2   : > { %498 = vst.msk [vmem:[#allocation2] sm:$0xff] %vm433_vm5, %v415_v58  ;;  %421 = vperm.xlu0 %1052, %v415_v58   ;;  %v416_v8 = vsub.f32 %v411_v57, %v415_v58 }
 0x3f4   : > { %v417_v9 = vmul.f32 1.442695, %v416_v8 }
 0x3f6   : > { %1054 = vset.pattern.permute.xlu0 %v1120_v59  ;;  %1068 = vpow2.f32 %v417_v9 }
 0x3f7   : > { %v559_v60 = vpop.xlane.xlu0 %558 }
 0x3f9   : > { %v1239_v61 = vld [vmem:[#allocation2] sm:$0xff] }
 0x3fa   : > { %v1242_v62 = vmax.f32 %v1239_v61, %v559_v60 }
 0x3fc   : > { %v561_v63 = vsub.f32 %v1239_v61, %v1242_v62  ;;  %643 = vst.msk [vmem:[#allocation2] sm:$0xff] %vm578_vm6, %v1242_v62  ;;  %566 = vperm.xlu1 %1053, %v1242_v62  }
 0x3ff   : > { %v704_v3 = vpop.xlane.xlu0 %703 }
 0x400   : > { %443 = vrot.lane.b32.xlu1 %v1172_v2, %s1121_s28  ;;  %v1069_v12 = vpop.eup %1068 }
 0x401   : > { %1055 = vset.pattern.permute.xlu1 %v1110_v14 }
 0x403   : > { %v701_v4 = vld [vmem:[#allocation2] sm:$0xff] }
 0x404   : > { %v705_v5 = vmax.f32 %v701_v4, %v704_v3  ;;  %588 = vrot.lane.b32.xlu1 %v1172_v2, %s1122_s29 }
 0x406   : > { %788 = vst.msk [vmem:[#allocation2] sm:$0xff] %vm723_vm7, %v705_v5  ;;  %711 = vperm.xlu0 %1054, %v705_v5   ;;  %v706_v10 = vsub.f32 %v701_v4, %v705_v5 }
 0x408   : > { %733 = vrot.lane.b32.xlu1 %v1172_v2, %s1123_s30  ;;  %v707_v11 = vmul.f32 1.442695, %v706_v10 }
 0x40a   : > { %1056 = vset.pattern.permute.xlu0 %v1118_v52  ;;  %1070 = vpow2.f32 %v707_v11 }
 0x40c   : > { %297 = vperm.xlu1 %1055, %v1258_v6  }
 0x410   : > { %1057 = vset.pattern.permute.xlu1 %v1119_v55 }
 0x414   : > { %v1264_v2 = vpop.eup %1070 }
 0x425   : > { %289 = vadd.xlane.f32.xlu0 %v288_v7 }
 0x43b   : > { %438 = vperm.xlu0 %1056, %v1069_v12  }
 0x43f   : > { %1058 = vset.pattern.permute.xlu0 %v1120_v59 }
 0x440   : > { %728 = vperm.xlu0 %1058, %v1264_v2  }
 0x444   : > { %1060 = vset.pattern.permute.xlu0 %v1118_v52 }
 0x471   : > { %v422_v13 = vpop.permute.xlu0 %421 }
 0x472   : > { %v424_v15 = vsub.f32 %v1224_v39, %v422_v13 }
 0x474   : > { %v425_v16 = vmul.f32 1.442695, %v424_v15 }
 0x476   : > { %1072 = vpow2.f32 %v425_v16 }
 0x47b   : > { %v567_v17 = vpop.permute.xlu1 %566 }
 0x47c   : > { %v569_v18 = vsub.f32 %v1228_v44, %v567_v17  ;;  %v287_v44 = vmul.f32 %v1258_v6, %v286_v43 }
 0x47e   : > { %v570_v19 = vmul.f32 1.442695, %v569_v18 }
 0x47f   : > { %v444_v20 = vpop.permute.xlu1 %443 }
 0x480   : > { %v1073_v21 = vpop.eup %1072  ;;  %1074 = vpow2.f32 %v570_v19  ;;  %v449_v22 = vsel %vm307_vm4, %v444_v20, 0 }
 0x481   : > { %977 = vmatpush3.bf16.msra.mxu0 %v449_v22  ;;  %v429_v23 = vsel %vm223_vm1, %v1073_v21, 0.0  ;;  %v442_v24 = vpack.c.bf16 %v1073_v21, %v1073_v21 }
 0x482   : > { %430 = vadd.xlane.f32.xlu1 %v429_v23  ;;  %988 = vmatprep.subr.bf16.mxu0 %v1106_v0 }
 0x483   : > { %v589_v25 = vpop.permute.xlu1 %588 }
 0x484   : > { %v594_v26 = vsel %vm307_vm4, %v589_v25, 0  ;;  %979 = vmatmul.mubr.msk.bf16.vlgmr.msra.gmra.mrb[4].mxu0 %vm223_vm1, %v442_v24 }
 0x485   : > { %v712_v27 = vpop.permute.xlu0 %711  ;;  %989 = vmatpush3.bf16.msra.mxu0 %v594_v26  ;;  %990 = vmatprep.mubr.msk.bf16.mxu0 %vm1107_vm0, %v1106_v0 }
 0x486   : > { %v714_v28 = vsub.f32 %v1232_v49, %v712_v27  ;;  %1000 = vmatprep.subr.bf16.mxu0 %v1106_v0 }
 0x487   : > { %v734_v29 = vpop.permute.xlu1 %733 }
 0x488   : > { %v715_v30 = vmul.f32 1.442695, %v714_v28  ;;  %v739_v33 = vsel %vm307_vm4, %v734_v29, 0 }
 0x48a   : > { %v1075_v32 = vpop.eup %1074  ;;  %1076 = vpow2.f32 %v715_v30 }
 0x48b   : > { %v298_v34 = vpop.permute.xlu1 %297  ;;  %v574_v36 = vsel %vm223_vm1, %v1075_v32, 0.0  ;;  %v587_v37 = vpack.c.bf16 %v1075_v32, %v1075_v32 }
 0x48c   : > { %v300_v38 = vmul.f32 %v298_v34, %v294_v31  ;;  %575 = vadd.xlane.f32.xlu1 %v574_v36 }
 0x48d   : > { %991 = vmatmul.mubr.msk.bf16.vlgmr.msra.gmra.mrb[8].mxu0 %vm223_vm1, %v587_v37 }
 0x48e   : > { %v351_v39 = vadd.f32 %v1222_v35, %v300_v38  ;;  %1001 = vmatpush3.bf16.msra.mxu0 %v739_v33  ;;  %1002 = vmatprep.mubr.msk.bf16.mxu0 %vm1107_vm0, %v1106_v0  ;;  %v562_v0 = vmul.f32 1.442695, %v561_v63 }
 0x490   : > { %352 = vst.msk [vmem:[#allocation4] sm:$0xff] %vm223_vm1, %v351_v39  ;;  %1078 = vpow2.f32 %v562_v0 }
 0x494   : > { %v1077_v40 = vpop.eup %1076 }
 0x495   : > { %v719_v41 = vsel %vm223_vm1, %v1077_v40, 0.0  ;;  %v732_v42 = vpack.c.bf16 %v1077_v40, %v1077_v40 }
 0x496   : > { %720 = vadd.xlane.f32.xlu1 %v719_v41 }
 0x497   : > { %1003 = vmatmul.mubr.msk.bf16.vlgmr.msra.gmra.mrb[12].mxu0 %vm223_vm1, %v732_v42 }
 0x49a   : > { %v1079_v50 = vpop.eup %1078 }
 0x4b2   : > { %v290_v45 = vpop.xlane.xlu0 %289 }
 0x4b3   : > { %v291_v46 = vadd.f32 %v290_v45, %v287_v44 }
 0x4b5   : > { %293 = vst.msk [vmem:[#allocation3] sm:$0xff] %vm292_vm3, %v291_v46 }
 0x4bc   : > { %v427_v35 = vld [vmem:[#allocation3] sm:$0xff] }
 0x4bd   : > { %v428_v47 = vmul.f32 %v1069_v12, %v427_v35 }
 0x50f   : > { %v431_v48 = vpop.xlane.xlu1 %430 }
 0x510   : > { %v432_v49 = vadd.f32 %v431_v48, %v428_v47 }
 0x512   : > { %434 = vst.msk [vmem:[#allocation3] sm:$0xff] %vm433_vm5, %v432_v49 }
 0x519   : > { %v572_v51 = vld [vmem:[#allocation3] sm:$0xff]  ;;  %v576_v53 = vpop.xlane.xlu1 %575 }
 0x51a   : > { %v573_v52 = vmul.f32 %v1079_v50, %v572_v51 }
 0x51c   : > { %v577_v54 = vadd.f32 %v576_v53, %v573_v52 }
 0x51e   : > { %579 = vst.msk [vmem:[#allocation3] sm:$0xff] %vm578_vm6, %v577_v54 }
 0x523   : > { %v721_v58 = vpop.xlane.xlu1 %720 }
 0x525   : > { %v717_v56 = vld [vmem:[#allocation3] sm:$0xff] }
 0x526   : > { %v718_v57 = vmul.f32 %v1264_v2, %v717_v56  ;;  %v439_v2 = vpop.permute.xlu0 %438 }
 0x528   : > { %v722_v60 = vadd.f32 %v721_v58, %v718_v57 }
 0x52a   : > { %724 = vst.msk [vmem:[#allocation3] sm:$0xff] %vm723_vm7, %v722_v60 }
 0x531   : > { %v802_v61 = vld [vmem:[#allocation3] sm:$0xff] }
 0x532   : > { %1080 = vrcp.f32 %v802_v61 }
 0x53c   : > { %v1081_v62 = vpop.eup %1080 }
 0x53d   : > { %807 = vperm.xlu0 %1060, %v1081_v62  }
 0x541   : > { %1063 = vset.pattern.permute.xlu0 %v1120_v59 }
 0x557   : > { %v485_v63 = vpop.f32.mrb[4].mxu0 }
 0x558   : > { %492 = vrot.lane.b32.xlu1 %v485_v63, %s1124_s3  ;;  %v980_v1 = vpop.f32.mrb[5].mxu0 }
 0x559   : > { %v488_v3 = vpop.f32.mrb[6].mxu0 }
 0x55a   : > { %v981_v4 = vpop.f32.mrb[7].mxu0 }
 0x55c   : > { %583 = vperm.xlu1 %1057, %v1079_v50  }
 0x560   : > { %v630_v5 = vpop.f32.mrb[8].mxu0  ;;  %1059 = vset.pattern.permute.xlu1 %v1110_v14  ;;  %v435_v14 = vld [vmem:[#allocation4] sm:$0xff] }
 0x561   : > { %637 = vrot.lane.b32.xlu1 %v630_v5, %s1125_s4  ;;  %v992_v6 = vpop.f32.mrb[9].mxu0  ;;  %v441_v13 = vmul.f32 %v439_v2, %v435_v14 }
 0x562   : > { %v633_v7 = vpop.f32.mrb[10].mxu0 }
 0x563   : > { %v993_v8 = vpop.f32.mrb[11].mxu0 }
 0x565   : > { %797 = vperm.xlu1 %1059, %v1081_v62  }
 0x569   : > { %1061 = vset.pattern.permute.xlu1 %v1119_v55 }
 0x56a   : > { %v775_v9 = vpop.f32.mrb[12].mxu0 }
 0x56b   : > { %782 = vrot.lane.b32.xlu1 %v775_v9, %s1126_s5  ;;  %v1004_v10 = vpop.f32.mrb[13].mxu0 }
 0x56c   : > { %v778_v11 = vpop.f32.mrb[14].mxu0 }
 0x56d   : > { %v1005_v12 = vpop.f32.mrb[15].mxu0 }
 0x56f   : > { %817 = vperm.xlu1 %1061, %v1081_v62  }
 0x573   : > { %1062 = vset.pattern.permute.xlu1 %v1120_v59  ;;  %v729_v59 = vpop.permute.xlu0 %728 }
 0x574   : > { %827 = vperm.xlu1 %1062, %v1081_v62  }
 0x5bc   : > { %v808_v27 = vpop.permute.xlu0 %807 }
 0x5ca   : > { %v493_v15 = vpop.permute.xlu1 %492 }
 0x5cb   : > { %v495_v16 = vadd.f32 %v493_v15, %v441_v13 }
 0x5cd   : > { %497 = vst.msk [vmem:[#allocation4] sm:$0xff] %vm496_vm9, %v495_v16 }
 0x5d4   : > { %v580_v55 = vld [vmem:[#allocation4] sm:$0xff] }
 0x5db   : > { %v584_v17 = vpop.permute.xlu1 %583 }
 0x5dc   : > { %v586_v18 = vmul.f32 %v584_v17, %v580_v55 }
 0x5df   : > { %v638_v19 = vpop.permute.xlu1 %637 }
 0x5e0   : > { %v640_v20 = vadd.f32 %v638_v19, %v586_v18 }
 0x5e2   : > { %642 = vst.msk [vmem:[#allocation4] sm:$0xff] %vm641_vm10, %v640_v20 }
 0x5e4   : > { %v798_v21 = vpop.permute.xlu1 %797 }
 0x5e8   : > { %v783_v24 = vpop.permute.xlu1 %782 }
 0x5e9   : > { %v725_v22 = vld [vmem:[#allocation4] sm:$0xff] }
 0x5ea   : > { %v731_v23 = vmul.f32 %v729_v59, %v725_v22 }
 0x5ec   : > { %v785_v25 = vadd.f32 %v783_v24, %v731_v23 }
 0x5ee   : > { %787 = vst.msk [vmem:[#allocation4] sm:$0xff] %vm786_vm11, %v785_v25  ;;  %v818_v26 = vpop.permute.xlu1 %817 }
 0x5f3   : > { %v828_v32 = vpop.permute.xlu1 %827 }
 0x5f5   : > { %v794_v28 = vld [vmem:[#allocation4] sm:$0xff] }
 0x5f6   : > { %v800_v29 = vmul.f32 %v798_v21, %v794_v28  ;;  %v810_v30 = vmul.f32 %v808_v27, %v794_v28  ;;  %v820_v31 = vmul.f32 %v818_v26, %v794_v28  ;;  %v830_v33 = vmul.f32 %v828_v32, %v794_v28 }
 0x5f8   : > { %801 = vst.msk [vmem:[%s204_s8] sm:$0xff] %vm223_vm1, %v800_v29 }
 0x5f9   : > { %811 = vst.msk [vmem:[%s204_s8] sm:$0xff] %vm496_vm9, %v810_v30 }
 0x5fa   : > { %821 = vst.msk [vmem:[%s204_s8] sm:$0xff] %vm641_vm10, %v820_v31 }
 0x5fb   : > { %831 = vst.msk [vmem:[%s204_s8] sm:$0xff] %vm786_vm11, %v830_v33 }
 0x5fc PF: > { %s12_s11 = sadd.s32 1, %s1104_s11   ;;  %s1324_s9 = smov %s1100_s10 }
 0x5fd   : > { %p9_p5 = scmp.ge.s32.totalorder %s12_s11, 4   ;;  %s1325_s10 = smov %s1327_s12 }
 0x5ff   :  { %11 = sbr.rel (!%p9_p5) target bundleno = 2 (0x2), region = 69 }

</bundles_post_ra>
